<compile_context>
chip_gen: v7x
topology: tpu7x:2x2x1
jax: 0.10.0
libtpu: 0.0.40
codegen_flags: <defaults>
</compile_context>

<pallas_src>
import jax
import jax.numpy as jnp
from jax import lax
from jax.experimental import pallas as pl
from jax.experimental.pallas import tpu as pltpu

INPUT_SIZE = 2
HIDDEN = 32
OUTPUT = 1
NUM_LAYERS = 2
B_BLK = 8           # sequences handled per grid step; multiple of 8 sublanes


def critic_kernel(x_ref, h0_ref,
                  wih0_ref, whh0_ref, b0_ref,
                  w1cat_ref, b1_ref,
                  wfc1_ref, bfc1_ref, wfc2_ref, bfc2_ref,
                  out_ref, hn_ref):
    seq = x_ref.shape[1] // B_BLK

    # Load every weight once; the values stay resident for the whole loop.
    wih0 = wih0_ref[...]        # (INPUT_SIZE, H)
    whh0 = whh0_ref[...]        # (H, H)
    b0 = b0_ref[...]            # (1, H)   (b_ih0 + b_hh0)
    w1cat = w1cat_ref[...]      # (2H, H)  == [wih1; whh1]
    b1 = b1_ref[...]            # (1, H)   (b_ih1 + b_hh1)
    wfc1 = wfc1_ref[...]        # (H, H)
    bfc1 = bfc1_ref[...]        # (1, H)
    wfc2 = wfc2_ref[...]        # (H, OUTPUT)
    bfc2 = bfc2_ref[...]        # (1, OUTPUT)

    # ---- Layer-0 input projection for ALL (t, batch) rows on the VPU ----
    # K == INPUT_SIZE == 2: two broadcast multiply-adds beat a padded MXU
    # matmul and keep the MXU free for step 0 of the recurrence.
    xall = x_ref[0]                               # (seq*B_BLK, INPUT_SIZE)
    xproj = xall[:, 0:1] * wih0[0:1, :]
    for k in range(1, INPUT_SIZE):
        xproj = xproj + xall[:, k:k + 1] * wih0[k:k + 1, :]
    xproj = xproj + b0                            # (seq*B_BLK, H)

    # ---- Initial hidden state: one load, then value slices ----
    h_all = h0_ref[0]                             # (NUM_LAYERS*B_BLK, H)
    h0 = h_all[0:B_BLK, :]                        # layer 0, (B_BLK, H)
    h1 = h_all[B_BLK:2 * B_BLK, :]                # layer 1, (B_BLK, H)

    # ---- Fused, fully-unrolled time loop (both RNN layers + fc head) ----
    out_rows = []
    for t in range(seq):
        # layer-0 recurrence
        pre0 = xproj[t * B_BLK:(t + 1) * B_BLK, :] + jnp.dot(
            h0, whh0, preferred_element_type=jnp.float32)
        h0 = jnp.tanh(pre0)

        # layer-1: single fused matmul against [wih1; whh1]
        h01 = jnp.concatenate([h0, h1], axis=1)   # (B_BLK, 2H)
        pre1 = jnp.dot(h01, w1cat, preferred_element_type=jnp.float32) + b1
        h1 = jnp.tanh(pre1)

        # fc1 + ReLU + fc2 folded into the loop: off the recurrence critical
        # path, these matmuls hide under the next step's MXU latency.
        hid = jnp.maximum(
            jnp.dot(h1, wfc1, preferred_element_type=jnp.float32) + bfc1, 0.0)
        out_rows.append(
            jnp.dot(hid, wfc2, preferred_element_type=jnp.float32) + bfc2)

    out_ref[0] = jnp.concatenate(out_rows, axis=0)       # (seq*B_BLK, OUTPUT)
    hn_ref[0] = jnp.concatenate([h0, h1], axis=0)        # (2*B_BLK, H)


def critic_forward(x, h0, params):
    """x: (B, seq, INPUT_SIZE) batch_first; h0: (NUM_LAYERS, B, HIDDEN)."""
    wih0, whh0, b0, wih1, whh1, b1, wfc1, bfc1, wfc2, bfc2 = params
    B, seq, _ = x.shape
    assert B % B_BLK == 0, "batch must be a multiple of B_BLK"
    nb = B // B_BLK

    # Fuse layer-1's two weights -> one MXU push per step.
    w1cat = jnp.concatenate([wih1, whh1], axis=0)         # (2H, H)

    # Rearrange so each grid step owns a contiguous, sublane-aligned slab of
    # B_BLK sequences, rows ordered time-major within the block.
    x_k = (x.reshape(nb, B_BLK, seq, INPUT_SIZE)
            .transpose(0, 2, 1, 3)
            .reshape(nb, seq * B_BLK, INPUT_SIZE))
    h_k = (h0.reshape(NUM_LAYERS, nb, B_BLK, HIDDEN)
             .transpose(1, 0, 2, 3)
             .reshape(nb, NUM_LAYERS * B_BLK, HIDDEN))

    def full2d(shp):
        return pl.BlockSpec(shp, lambda i: (0, 0))

    out_k, hn_k = pl.pallas_call(
        critic_kernel,
        grid=(nb,),
        out_shape=(
            jax.ShapeDtypeStruct((nb, seq * B_BLK, OUTPUT), jnp.float32),
            jax.ShapeDtypeStruct((nb, NUM_LAYERS * B_BLK, HIDDEN), jnp.float32),
        ),
        in_specs=[
            pl.BlockSpec((1, seq * B_BLK, INPUT_SIZE), lambda i: (i, 0, 0)),
            pl.BlockSpec((1, NUM_LAYERS * B_BLK, HIDDEN), lambda i: (i, 0, 0)),
            full2d((INPUT_SIZE, HIDDEN)),
            full2d((HIDDEN, HIDDEN)),
            full2d((1, HIDDEN)),
            full2d((2 * HIDDEN, HIDDEN)),
            full2d((1, HIDDEN)),
            full2d((HIDDEN, HIDDEN)),
            full2d((1, HIDDEN)),
            full2d((HIDDEN, OUTPUT)),
            full2d((1, OUTPUT)),
        ],
        out_specs=(
            pl.BlockSpec((1, seq * B_BLK, OUTPUT), lambda i: (i, 0, 0)),
            pl.BlockSpec((1, NUM_LAYERS * B_BLK, HIDDEN), lambda i: (i, 0, 0)),
        ),
        compiler_params=pltpu.CompilerParams(
            dimension_semantics=("parallel",)),
    )(x_k, h_k, wih0, whh0, b0, w1cat, b1, wfc1, bfc1, wfc2, bfc2)

    out = (out_k.reshape(nb, seq, B_BLK, OUTPUT)
                .transpose(0, 2, 1, 3)
                .reshape(B, seq, OUTPUT))
    hn = (hn_k.reshape(nb, NUM_LAYERS, B_BLK, HIDDEN)
              .transpose(1, 0, 2, 3)
              .reshape(NUM_LAYERS, B, HIDDEN))
    return out, hn


def init_params(key):
    """Deterministic init mimicking PyTorch's U(-1/sqrt(fan), 1/sqrt(fan)).

    Weights are stored PRE-TRANSPOSED (in_features x out_features); RNN
    biases are the combined b_ih + b_hh rows."""
    ks = jax.random.split(key, 12)
    k_rnn = 1.0 / jnp.sqrt(HIDDEN)
    k_fc = 1.0 / jnp.sqrt(HIDDEN)

    def u(k, shape, bound):
        return jax.random.uniform(k, shape, jnp.float32, -bound, bound)

    wih0 = u(ks[0], (INPUT_SIZE, HIDDEN), k_rnn)
    whh0 = u(ks[1], (HIDDEN, HIDDEN), k_rnn)
    b0 = u(ks[2], (1, HIDDEN), k_rnn) + u(ks[3], (1, HIDDEN), k_rnn)
    wih1 = u(ks[4], (HIDDEN, HIDDEN), k_rnn)
    whh1 = u(ks[5], (HIDDEN, HIDDEN), k_rnn)
    b1 = u(ks[6], (1, HIDDEN), k_rnn) + u(ks[7], (1, HIDDEN), k_rnn)
    wfc1 = u(ks[8], (HIDDEN, HIDDEN), k_fc)
    bfc1 = u(ks[9], (1, HIDDEN), k_fc)
    wfc2 = u(ks[10], (HIDDEN, OUTPUT), k_fc)
    bfc2 = u(ks[11], (1, OUTPUT), k_fc)
    return (wih0, whh0, b0, wih1, whh1, b1, wfc1, bfc1, wfc2, bfc2)


def reference_forward(x, h0, params):
    """Pure-JAX reference matching torch semantics (batched, batch_first)."""
    wih0, whh0, b0, wih1, whh1, b1, wfc1, bfc1, wfc2, bfc2 = params

    def rnn_layer(inp, h_init, wih, whh, b):
        def step(h, x_t):
            h_new = jnp.tanh(x_t @ wih + h @ whh + b)
            return h_new, h_new
        inp_t = jnp.transpose(inp, (1, 0, 2))        # (seq, B, in)
        h_last, outs = lax.scan(step, h_init, inp_t)
        return jnp.transpose(outs, (1, 0, 2)), h_last

    o0, h0n = rnn_layer(x, h0[0], wih0, whh0, b0)
    o1, h1n = rnn_layer(o0, h0[1], wih1, whh1, b1)
    hid = jnp.maximum(o1 @ wfc1 + bfc1, 0.0)
    out = hid @ wfc2 + bfc2
    return out, jnp.stack([h0n, h1n])


if __name__ == "__main__":
    key = jax.random.PRNGKey(0)
    k_x, k_p = jax.random.split(key)

    B, seq = 16, 8   # 2 batch blocks of 8 sequences -> exercises the grid
    x = jax.random.normal(k_x, (B, seq, INPUT_SIZE), jnp.float32)
    h0 = jnp.zeros((NUM_LAYERS, B, HIDDEN), jnp.float32)  # self.hidden per seq
    params = init_params(k_p)

    out, hn = critic_forward(x, h0, params)
    out = jax.block_until_ready(out)
    hn = jax.block_until_ready(hn)

    ref_out, ref_hn = reference_forward(x, h0, params)
    assert out.shape == (B, seq, OUTPUT)
    assert hn.shape == (NUM_LAYERS, B, HIDDEN)
    assert jnp.allclose(out, ref_out, atol=5e-4, rtol=5e-4), \
        float(jnp.max(jnp.abs(out - ref_out)))
    assert jnp.allclose(hn, ref_hn, atol=5e-4, rtol=5e-4), \
        float(jnp.max(jnp.abs(hn - ref_hn)))

    print("KERNEL_OK")
</pallas_src>

<mosaic_0001>
module attributes {stable_mosaic.version = 11 : i64} {
  func.func @critic_kernel(%arg0: i32, %arg1: memref<1x64x2xf32, #tpu.memory_space<vmem>>, %arg2: memref<1x16x32xf32, #tpu.memory_space<vmem>>, %arg3: memref<2x32xf32, #tpu.memory_space<vmem>>, %arg4: memref<32x32xf32, #tpu.memory_space<vmem>>, %arg5: memref<1x32xf32, #tpu.memory_space<vmem>>, %arg6: memref<64x32xf32, #tpu.memory_space<vmem>>, %arg7: memref<1x32xf32, #tpu.memory_space<vmem>>, %arg8: memref<32x32xf32, #tpu.memory_space<vmem>>, %arg9: memref<1x32xf32, #tpu.memory_space<vmem>>, %arg10: memref<32x1xf32, #tpu.memory_space<vmem>>, %arg11: memref<1x1xf32, #tpu.memory_space<vmem>>, %arg12: memref<1x64x1xf32, #tpu.memory_space<vmem>>, %arg13: memref<1x16x32xf32, #tpu.memory_space<vmem>>) attributes {dimension_semantics = [#tpu.dimension_semantics<parallel>], iteration_bounds = array<i64: 2>, scalar_prefetch = 0 : i64, scratch_operands = 0 : i64, tpu.core_type = #tpu.core_type<tc>, window_params = [{transform_indices = @transform_0, window_bounds = array<i64: 1, 64, 2>}, {transform_indices = @transform_1, window_bounds = array<i64: 1, 16, 32>}, {pipeline_mode = #tpu.pipeline_mode<synchronous>, transform_indices = @transform_2, window_bounds = array<i64: 2, 32>}, {pipeline_mode = #tpu.pipeline_mode<synchronous>, transform_indices = @transform_3, window_bounds = array<i64: 32, 32>}, {pipeline_mode = #tpu.pipeline_mode<synchronous>, transform_indices = @transform_4, window_bounds = array<i64: 1, 32>}, {pipeline_mode = #tpu.pipeline_mode<synchronous>, transform_indices = @transform_5, window_bounds = array<i64: 64, 32>}, {pipeline_mode = #tpu.pipeline_mode<synchronous>, transform_indices = @transform_6, window_bounds = array<i64: 1, 32>}, {pipeline_mode = #tpu.pipeline_mode<synchronous>, transform_indices = @transform_7, window_bounds = array<i64: 32, 32>}, {pipeline_mode = #tpu.pipeline_mode<synchronous>, transform_indices = @transform_8, window_bounds = array<i64: 1, 32>}, {pipeline_mode = #tpu.pipeline_mode<synchronous>, transform_indices = @transform_9, window_bounds = array<i64: 32, 1>}, {pipeline_mode = #tpu.pipeline_mode<synchronous>, transform_indices = @transform_10, window_bounds = array<i64: 1, 1>}, {transform_indices = @transform_11, window_bounds = array<i64: 1, 64, 1>}, {transform_indices = @transform_12, window_bounds = array<i64: 1, 16, 32>}]} {
    %c0 = arith.constant 0 : index
    %c0_0 = arith.constant 0 : index
    %0 = vector.load %arg3[%c0, %c0_0] : memref<2x32xf32, #tpu.memory_space<vmem>>, vector<2x32xf32>
    %c0_1 = arith.constant 0 : index
    %c0_2 = arith.constant 0 : index
    %1 = vector.load %arg4[%c0_1, %c0_2] : memref<32x32xf32, #tpu.memory_space<vmem>>, vector<32x32xf32>
    %c0_3 = arith.constant 0 : index
    %c0_4 = arith.constant 0 : index
    %2 = vector.load %arg5[%c0_3, %c0_4] : memref<1x32xf32, #tpu.memory_space<vmem>>, vector<1x32xf32>
    %c0_5 = arith.constant 0 : index
    %c0_6 = arith.constant 0 : index
    %3 = vector.load %arg6[%c0_5, %c0_6] : memref<64x32xf32, #tpu.memory_space<vmem>>, vector<64x32xf32>
    %c0_7 = arith.constant 0 : index
    %c0_8 = arith.constant 0 : index
    %4 = vector.load %arg7[%c0_7, %c0_8] : memref<1x32xf32, #tpu.memory_space<vmem>>, vector<1x32xf32>
    %c0_9 = arith.constant 0 : index
    %c0_10 = arith.constant 0 : index
    %5 = vector.load %arg8[%c0_9, %c0_10] : memref<32x32xf32, #tpu.memory_space<vmem>>, vector<32x32xf32>
    %c0_11 = arith.constant 0 : index
    %c0_12 = arith.constant 0 : index
    %6 = vector.load %arg9[%c0_11, %c0_12] : memref<1x32xf32, #tpu.memory_space<vmem>>, vector<1x32xf32>
    %c0_13 = arith.constant 0 : index
    %c0_14 = arith.constant 0 : index
    %7 = vector.load %arg10[%c0_13, %c0_14] : memref<32x1xf32, #tpu.memory_space<vmem>>, vector<32x1xf32>
    %c0_15 = arith.constant 0 : index
    %c0_16 = arith.constant 0 : index
    %8 = vector.load %arg11[%c0_15, %c0_16] : memref<1x1xf32, #tpu.memory_space<vmem>>, vector<1x1xf32>
    %c0_17 = arith.constant 0 : index
    %c0_18 = arith.constant 0 : index
    %c0_19 = arith.constant 0 : index
    %9 = vector.load %arg1[%c0_17, %c0_18, %c0_19] : memref<1x64x2xf32, #tpu.memory_space<vmem>>, vector<1x64x2xf32>
    %10 = vector.shape_cast %9 : vector<1x64x2xf32> to vector<64x2xf32>
    %11 = vector.extract_strided_slice %10 {offsets = [0, 0], sizes = [64, 1], strides = [1, 1]} : vector<64x2xf32> to vector<64x1xf32>
    %12 = vector.extract_strided_slice %0 {offsets = [0, 0], sizes = [1, 32], strides = [1, 1]} : vector<2x32xf32> to vector<1x32xf32>
    %13 = vector.broadcast %11 : vector<64x1xf32> to vector<64x32xf32>
    %14 = vector.broadcast %12 : vector<1x32xf32> to vector<64x32xf32>
    %15 = arith.mulf %13, %14 : vector<64x32xf32>
    %16 = vector.extract_strided_slice %10 {offsets = [0, 1], sizes = [64, 1], strides = [1, 1]} : vector<64x2xf32> to vector<64x1xf32>
    %17 = vector.extract_strided_slice %0 {offsets = [1, 0], sizes = [1, 32], strides = [1, 1]} : vector<2x32xf32> to vector<1x32xf32>
    %18 = vector.broadcast %16 : vector<64x1xf32> to vector<64x32xf32>
    %19 = vector.broadcast %17 : vector<1x32xf32> to vector<64x32xf32>
    %20 = arith.mulf %18, %19 : vector<64x32xf32>
    %21 = arith.addf %15, %20 : vector<64x32xf32>
    %22 = vector.broadcast %2 : vector<1x32xf32> to vector<64x32xf32>
    %23 = arith.addf %21, %22 : vector<64x32xf32>
    %c0_20 = arith.constant 0 : index
    %c0_21 = arith.constant 0 : index
    %c0_22 = arith.constant 0 : index
    %24 = vector.load %arg2[%c0_20, %c0_21, %c0_22] : memref<1x16x32xf32, #tpu.memory_space<vmem>>, vector<1x16x32xf32>
    %25 = vector.shape_cast %24 : vector<1x16x32xf32> to vector<16x32xf32>
    %26 = vector.extract_strided_slice %25 {offsets = [0, 0], sizes = [8, 32], strides = [1, 1]} : vector<16x32xf32> to vector<8x32xf32>
    %27 = vector.extract_strided_slice %25 {offsets = [8, 0], sizes = [8, 32], strides = [1, 1]} : vector<16x32xf32> to vector<8x32xf32>
    %28 = vector.extract_strided_slice %23 {offsets = [0, 0], sizes = [8, 32], strides = [1, 1]} : vector<64x32xf32> to vector<8x32xf32>
    %cst = arith.constant dense<0.000000e+00> : vector<8x32xf32>
    %29 = tpu.matmul %26, %1, %cst {dimension_numbers = #tpu.dot_dimension_numbers<[1], [0], [0], [1], [0, 0, 1, 1], [], []>} : vector<8x32xf32>, vector<32x32xf32>, vector<8x32xf32> -> vector<8x32xf32>
    %30 = arith.addf %28, %29 : vector<8x32xf32>
    %31 = math.tanh %30 : vector<8x32xf32>
    %32 = tpu.concatenate %31, %27 in 1 : vector<8x32xf32>, vector<8x32xf32> -> vector<8x64xf32>
    %cst_23 = arith.constant dense<0.000000e+00> : vector<8x32xf32>
    %33 = tpu.matmul %32, %3, %cst_23 {dimension_numbers = #tpu.dot_dimension_numbers<[1], [0], [0], [1], [0, 0, 1, 1], [], []>} : vector<8x64xf32>, vector<64x32xf32>, vector<8x32xf32> -> vector<8x32xf32>
    %34 = vector.broadcast %4 : vector<1x32xf32> to vector<8x32xf32>
    %35 = arith.addf %33, %34 : vector<8x32xf32>
    %36 = math.tanh %35 : vector<8x32xf32>
    %cst_24 = arith.constant dense<0.000000e+00> : vector<8x32xf32>
    %37 = tpu.matmul %36, %5, %cst_24 {dimension_numbers = #tpu.dot_dimension_numbers<[1], [0], [0], [1], [0, 0, 1, 1], [], []>} : vector<8x32xf32>, vector<32x32xf32>, vector<8x32xf32> -> vector<8x32xf32>
    %38 = vector.broadcast %6 : vector<1x32xf32> to vector<8x32xf32>
    %39 = arith.addf %37, %38 : vector<8x32xf32>
    %cst_25 = arith.constant 0.000000e+00 : f32
    %40 = vector.broadcast %cst_25 : f32 to vector<8x32xf32>
    %41 = arith.maximumf %39, %40 : vector<8x32xf32>
    %cst_26 = arith.constant dense<0.000000e+00> : vector<8x1xf32>
    %42 = tpu.matmul %41, %7, %cst_26 {dimension_numbers = #tpu.dot_dimension_numbers<[1], [0], [0], [1], [0, 0, 1, 1], [], []>} : vector<8x32xf32>, vector<32x1xf32>, vector<8x1xf32> -> vector<8x1xf32>
    %43 = vector.broadcast %8 : vector<1x1xf32> to vector<8x1xf32>
    %44 = arith.addf %42, %43 : vector<8x1xf32>
    %45 = vector.extract_strided_slice %23 {offsets = [8, 0], sizes = [8, 32], strides = [1, 1]} : vector<64x32xf32> to vector<8x32xf32>
    %cst_27 = arith.constant dense<0.000000e+00> : vector<8x32xf32>
    %46 = tpu.matmul %31, %1, %cst_27 {dimension_numbers = #tpu.dot_dimension_numbers<[1], [0], [0], [1], [0, 0, 1, 1], [], []>} : vector<8x32xf32>, vector<32x32xf32>, vector<8x32xf32> -> vector<8x32xf32>
    %47 = arith.addf %45, %46 : vector<8x32xf32>
    %48 = math.tanh %47 : vector<8x32xf32>
    %49 = tpu.concatenate %48, %36 in 1 : vector<8x32xf32>, vector<8x32xf32> -> vector<8x64xf32>
    %cst_28 = arith.constant dense<0.000000e+00> : vector<8x32xf32>
    %50 = tpu.matmul %49, %3, %cst_28 {dimension_numbers = #tpu.dot_dimension_numbers<[1], [0], [0], [1], [0, 0, 1, 1], [], []>} : vector<8x64xf32>, vector<64x32xf32>, vector<8x32xf32> -> vector<8x32xf32>
    %51 = vector.broadcast %4 : vector<1x32xf32> to vector<8x32xf32>
    %52 = arith.addf %50, %51 : vector<8x32xf32>
    %53 = math.tanh %52 : vector<8x32xf32>
    %cst_29 = arith.constant dense<0.000000e+00> : vector<8x32xf32>
    %54 = tpu.matmul %53, %5, %cst_29 {dimension_numbers = #tpu.dot_dimension_numbers<[1], [0], [0], [1], [0, 0, 1, 1], [], []>} : vector<8x32xf32>, vector<32x32xf32>, vector<8x32xf32> -> vector<8x32xf32>
    %55 = vector.broadcast %6 : vector<1x32xf32> to vector<8x32xf32>
    %56 = arith.addf %54, %55 : vector<8x32xf32>
    %cst_30 = arith.constant 0.000000e+00 : f32
    %57 = vector.broadcast %cst_30 : f32 to vector<8x32xf32>
    %58 = arith.maximumf %56, %57 : vector<8x32xf32>
    %cst_31 = arith.constant dense<0.000000e+00> : vector<8x1xf32>
    %59 = tpu.matmul %58, %7, %cst_31 {dimension_numbers = #tpu.dot_dimension_numbers<[1], [0], [0], [1], [0, 0, 1, 1], [], []>} : vector<8x32xf32>, vector<32x1xf32>, vector<8x1xf32> -> vector<8x1xf32>
    %60 = vector.broadcast %8 : vector<1x1xf32> to vector<8x1xf32>
    %61 = arith.addf %59, %60 : vector<8x1xf32>
    %62 = vector.extract_strided_slice %23 {offsets = [16, 0], sizes = [8, 32], strides = [1, 1]} : vector<64x32xf32> to vector<8x32xf32>
    %cst_32 = arith.constant dense<0.000000e+00> : vector<8x32xf32>
    %63 = tpu.matmul %48, %1, %cst_32 {dimension_numbers = #tpu.dot_dimension_numbers<[1], [0], [0], [1], [0, 0, 1, 1], [], []>} : vector<8x32xf32>, vector<32x32xf32>, vector<8x32xf32> -> vector<8x32xf32>
    %64 = arith.addf %62, %63 : vector<8x32xf32>
    %65 = math.tanh %64 : vector<8x32xf32>
    %66 = tpu.concatenate %65, %53 in 1 : vector<8x32xf32>, vector<8x32xf32> -> vector<8x64xf32>
    %cst_33 = arith.constant dense<0.000000e+00> : vector<8x32xf32>
    %67 = tpu.matmul %66, %3, %cst_33 {dimension_numbers = #tpu.dot_dimension_numbers<[1], [0], [0], [1], [0, 0, 1, 1], [], []>} : vector<8x64xf32>, vector<64x32xf32>, vector<8x32xf32> -> vector<8x32xf32>
    %68 = vector.broadcast %4 : vector<1x32xf32> to vector<8x32xf32>
    %69 = arith.addf %67, %68 : vector<8x32xf32>
    %70 = math.tanh %69 : vector<8x32xf32>
    %cst_34 = arith.constant dense<0.000000e+00> : vector<8x32xf32>
    %71 = tpu.matmul %70, %5, %cst_34 {dimension_numbers = #tpu.dot_dimension_numbers<[1], [0], [0], [1], [0, 0, 1, 1], [], []>} : vector<8x32xf32>, vector<32x32xf32>, vector<8x32xf32> -> vector<8x32xf32>
    %72 = vector.broadcast %6 : vector<1x32xf32> to vector<8x32xf32>
    %73 = arith.addf %71, %72 : vector<8x32xf32>
    %cst_35 = arith.constant 0.000000e+00 : f32
    %74 = vector.broadcast %cst_35 : f32 to vector<8x32xf32>
    %75 = arith.maximumf %73, %74 : vector<8x32xf32>
    %cst_36 = arith.constant dense<0.000000e+00> : vector<8x1xf32>
    %76 = tpu.matmul %75, %7, %cst_36 {dimension_numbers = #tpu.dot_dimension_numbers<[1], [0], [0], [1], [0, 0, 1, 1], [], []>} : vector<8x32xf32>, vector<32x1xf32>, vector<8x1xf32> -> vector<8x1xf32>
    %77 = vector.broadcast %8 : vector<1x1xf32> to vector<8x1xf32>
    %78 = arith.addf %76, %77 : vector<8x1xf32>
    %79 = vector.extract_strided_slice %23 {offsets = [24, 0], sizes = [8, 32], strides = [1, 1]} : vector<64x32xf32> to vector<8x32xf32>
    %cst_37 = arith.constant dense<0.000000e+00> : vector<8x32xf32>
    %80 = tpu.matmul %65, %1, %cst_37 {dimension_numbers = #tpu.dot_dimension_numbers<[1], [0], [0], [1], [0, 0, 1, 1], [], []>} : vector<8x32xf32>, vector<32x32xf32>, vector<8x32xf32> -> vector<8x32xf32>
    %81 = arith.addf %79, %80 : vector<8x32xf32>
    %82 = math.tanh %81 : vector<8x32xf32>
    %83 = tpu.concatenate %82, %70 in 1 : vector<8x32xf32>, vector<8x32xf32> -> vector<8x64xf32>
    %cst_38 = arith.constant dense<0.000000e+00> : vector<8x32xf32>
    %84 = tpu.matmul %83, %3, %cst_38 {dimension_numbers = #tpu.dot_dimension_numbers<[1], [0], [0], [1], [0, 0, 1, 1], [], []>} : vector<8x64xf32>, vector<64x32xf32>, vector<8x32xf32> -> vector<8x32xf32>
    %85 = vector.broadcast %4 : vector<1x32xf32> to vector<8x32xf32>
    %86 = arith.addf %84, %85 : vector<8x32xf32>
    %87 = math.tanh %86 : vector<8x32xf32>
    %cst_39 = arith.constant dense<0.000000e+00> : vector<8x32xf32>
    %88 = tpu.matmul %87, %5, %cst_39 {dimension_numbers = #tpu.dot_dimension_numbers<[1], [0], [0], [1], [0, 0, 1, 1], [], []>} : vector<8x32xf32>, vector<32x32xf32>, vector<8x32xf32> -> vector<8x32xf32>
    %89 = vector.broadcast %6 : vector<1x32xf32> to vector<8x32xf32>
    %90 = arith.addf %88, %89 : vector<8x32xf32>
    %cst_40 = arith.constant 0.000000e+00 : f32
    %91 = vector.broadcast %cst_40 : f32 to vector<8x32xf32>
    %92 = arith.maximumf %90, %91 : vector<8x32xf32>
    %cst_41 = arith.constant dense<0.000000e+00> : vector<8x1xf32>
    %93 = tpu.matmul %92, %7, %cst_41 {dimension_numbers = #tpu.dot_dimension_numbers<[1], [0], [0], [1], [0, 0, 1, 1], [], []>} : vector<8x32xf32>, vector<32x1xf32>, vector<8x1xf32> -> vector<8x1xf32>
    %94 = vector.broadcast %8 : vector<1x1xf32> to vector<8x1xf32>
    %95 = arith.addf %93, %94 : vector<8x1xf32>
    %96 = vector.extract_strided_slice %23 {offsets = [32, 0], sizes = [8, 32], strides = [1, 1]} : vector<64x32xf32> to vector<8x32xf32>
    %cst_42 = arith.constant dense<0.000000e+00> : vector<8x32xf32>
    %97 = tpu.matmul %82, %1, %cst_42 {dimension_numbers = #tpu.dot_dimension_numbers<[1], [0], [0], [1], [0, 0, 1, 1], [], []>} : vector<8x32xf32>, vector<32x32xf32>, vector<8x32xf32> -> vector<8x32xf32>
    %98 = arith.addf %96, %97 : vector<8x32xf32>
    %99 = math.tanh %98 : vector<8x32xf32>
    %100 = tpu.concatenate %99, %87 in 1 : vector<8x32xf32>, vector<8x32xf32> -> vector<8x64xf32>
    %cst_43 = arith.constant dense<0.000000e+00> : vector<8x32xf32>
    %101 = tpu.matmul %100, %3, %cst_43 {dimension_numbers = #tpu.dot_dimension_numbers<[1], [0], [0], [1], [0, 0, 1, 1], [], []>} : vector<8x64xf32>, vector<64x32xf32>, vector<8x32xf32> -> vector<8x32xf32>
    %102 = vector.broadcast %4 : vector<1x32xf32> to vector<8x32xf32>
    %103 = arith.addf %101, %102 : vector<8x32xf32>
    %104 = math.tanh %103 : vector<8x32xf32>
    %cst_44 = arith.constant dense<0.000000e+00> : vector<8x32xf32>
    %105 = tpu.matmul %104, %5, %cst_44 {dimension_numbers = #tpu.dot_dimension_numbers<[1], [0], [0], [1], [0, 0, 1, 1], [], []>} : vector<8x32xf32>, vector<32x32xf32>, vector<8x32xf32> -> vector<8x32xf32>
    %106 = vector.broadcast %6 : vector<1x32xf32> to vector<8x32xf32>
    %107 = arith.addf %105, %106 : vector<8x32xf32>
    %cst_45 = arith.constant 0.000000e+00 : f32
    %108 = vector.broadcast %cst_45 : f32 to vector<8x32xf32>
    %109 = arith.maximumf %107, %108 : vector<8x32xf32>
    %cst_46 = arith.constant dense<0.000000e+00> : vector<8x1xf32>
    %110 = tpu.matmul %109, %7, %cst_46 {dimension_numbers = #tpu.dot_dimension_numbers<[1], [0], [0], [1], [0, 0, 1, 1], [], []>} : vector<8x32xf32>, vector<32x1xf32>, vector<8x1xf32> -> vector<8x1xf32>
    %111 = vector.broadcast %8 : vector<1x1xf32> to vector<8x1xf32>
    %112 = arith.addf %110, %111 : vector<8x1xf32>
    %113 = vector.extract_strided_slice %23 {offsets = [40, 0], sizes = [8, 32], strides = [1, 1]} : vector<64x32xf32> to vector<8x32xf32>
    %cst_47 = arith.constant dense<0.000000e+00> : vector<8x32xf32>
    %114 = tpu.matmul %99, %1, %cst_47 {dimension_numbers = #tpu.dot_dimension_numbers<[1], [0], [0], [1], [0, 0, 1, 1], [], []>} : vector<8x32xf32>, vector<32x32xf32>, vector<8x32xf32> -> vector<8x32xf32>
    %115 = arith.addf %113, %114 : vector<8x32xf32>
    %116 = math.tanh %115 : vector<8x32xf32>
    %117 = tpu.concatenate %116, %104 in 1 : vector<8x32xf32>, vector<8x32xf32> -> vector<8x64xf32>
    %cst_48 = arith.constant dense<0.000000e+00> : vector<8x32xf32>
    %118 = tpu.matmul %117, %3, %cst_48 {dimension_numbers = #tpu.dot_dimension_numbers<[1], [0], [0], [1], [0, 0, 1, 1], [], []>} : vector<8x64xf32>, vector<64x32xf32>, vector<8x32xf32> -> vector<8x32xf32>
    %119 = vector.broadcast %4 : vector<1x32xf32> to vector<8x32xf32>
    %120 = arith.addf %118, %119 : vector<8x32xf32>
    %121 = math.tanh %120 : vector<8x32xf32>
    %cst_49 = arith.constant dense<0.000000e+00> : vector<8x32xf32>
    %122 = tpu.matmul %121, %5, %cst_49 {dimension_numbers = #tpu.dot_dimension_numbers<[1], [0], [0], [1], [0, 0, 1, 1], [], []>} : vector<8x32xf32>, vector<32x32xf32>, vector<8x32xf32> -> vector<8x32xf32>
    %123 = vector.broadcast %6 : vector<1x32xf32> to vector<8x32xf32>
    %124 = arith.addf %122, %123 : vector<8x32xf32>
    %cst_50 = arith.constant 0.000000e+00 : f32
    %125 = vector.broadcast %cst_50 : f32 to vector<8x32xf32>
    %126 = arith.maximumf %124, %125 : vector<8x32xf32>
    %cst_51 = arith.constant dense<0.000000e+00> : vector<8x1xf32>
    %127 = tpu.matmul %126, %7, %cst_51 {dimension_numbers = #tpu.dot_dimension_numbers<[1], [0], [0], [1], [0, 0, 1, 1], [], []>} : vector<8x32xf32>, vector<32x1xf32>, vector<8x1xf32> -> vector<8x1xf32>
    %128 = vector.broadcast %8 : vector<1x1xf32> to vector<8x1xf32>
    %129 = arith.addf %127, %128 : vector<8x1xf32>
    %130 = vector.extract_strided_slice %23 {offsets = [48, 0], sizes = [8, 32], strides = [1, 1]} : vector<64x32xf32> to vector<8x32xf32>
    %cst_52 = arith.constant dense<0.000000e+00> : vector<8x32xf32>
    %131 = tpu.matmul %116, %1, %cst_52 {dimension_numbers = #tpu.dot_dimension_numbers<[1], [0], [0], [1], [0, 0, 1, 1], [], []>} : vector<8x32xf32>, vector<32x32xf32>, vector<8x32xf32> -> vector<8x32xf32>
    %132 = arith.addf %130, %131 : vector<8x32xf32>
    %133 = math.tanh %132 : vector<8x32xf32>
    %134 = tpu.concatenate %133, %121 in 1 : vector<8x32xf32>, vector<8x32xf32> -> vector<8x64xf32>
    %cst_53 = arith.constant dense<0.000000e+00> : vector<8x32xf32>
    %135 = tpu.matmul %134, %3, %cst_53 {dimension_numbers = #tpu.dot_dimension_numbers<[1], [0], [0], [1], [0, 0, 1, 1], [], []>} : vector<8x64xf32>, vector<64x32xf32>, vector<8x32xf32> -> vector<8x32xf32>
    %136 = vector.broadcast %4 : vector<1x32xf32> to vector<8x32xf32>
    %137 = arith.addf %135, %136 : vector<8x32xf32>
    %138 = math.tanh %137 : vector<8x32xf32>
    %cst_54 = arith.constant dense<0.000000e+00> : vector<8x32xf32>
    %139 = tpu.matmul %138, %5, %cst_54 {dimension_numbers = #tpu.dot_dimension_numbers<[1], [0], [0], [1], [0, 0, 1, 1], [], []>} : vector<8x32xf32>, vector<32x32xf32>, vector<8x32xf32> -> vector<8x32xf32>
    %140 = vector.broadcast %6 : vector<1x32xf32> to vector<8x32xf32>
    %141 = arith.addf %139, %140 : vector<8x32xf32>
    %cst_55 = arith.constant 0.000000e+00 : f32
    %142 = vector.broadcast %cst_55 : f32 to vector<8x32xf32>
    %143 = arith.maximumf %141, %142 : vector<8x32xf32>
    %cst_56 = arith.constant dense<0.000000e+00> : vector<8x1xf32>
    %144 = tpu.matmul %143, %7, %cst_56 {dimension_numbers = #tpu.dot_dimension_numbers<[1], [0], [0], [1], [0, 0, 1, 1], [], []>} : vector<8x32xf32>, vector<32x1xf32>, vector<8x1xf32> -> vector<8x1xf32>
    %145 = vector.broadcast %8 : vector<1x1xf32> to vector<8x1xf32>
    %146 = arith.addf %144, %145 : vector<8x1xf32>
    %147 = vector.extract_strided_slice %23 {offsets = [56, 0], sizes = [8, 32], strides = [1, 1]} : vector<64x32xf32> to vector<8x32xf32>
    %cst_57 = arith.constant dense<0.000000e+00> : vector<8x32xf32>
    %148 = tpu.matmul %133, %1, %cst_57 {dimension_numbers = #tpu.dot_dimension_numbers<[1], [0], [0], [1], [0, 0, 1, 1], [], []>} : vector<8x32xf32>, vector<32x32xf32>, vector<8x32xf32> -> vector<8x32xf32>
    %149 = arith.addf %147, %148 : vector<8x32xf32>
    %150 = math.tanh %149 : vector<8x32xf32>
    %151 = tpu.concatenate %150, %138 in 1 : vector<8x32xf32>, vector<8x32xf32> -> vector<8x64xf32>
    %cst_58 = arith.constant dense<0.000000e+00> : vector<8x32xf32>
    %152 = tpu.matmul %151, %3, %cst_58 {dimension_numbers = #tpu.dot_dimension_numbers<[1], [0], [0], [1], [0, 0, 1, 1], [], []>} : vector<8x64xf32>, vector<64x32xf32>, vector<8x32xf32> -> vector<8x32xf32>
    %153 = vector.broadcast %4 : vector<1x32xf32> to vector<8x32xf32>
    %154 = arith.addf %152, %153 : vector<8x32xf32>
    %155 = math.tanh %154 : vector<8x32xf32>
    %cst_59 = arith.constant dense<0.000000e+00> : vector<8x32xf32>
    %156 = tpu.matmul %155, %5, %cst_59 {dimension_numbers = #tpu.dot_dimension_numbers<[1], [0], [0], [1], [0, 0, 1, 1], [], []>} : vector<8x32xf32>, vector<32x32xf32>, vector<8x32xf32> -> vector<8x32xf32>
    %157 = vector.broadcast %6 : vector<1x32xf32> to vector<8x32xf32>
    %158 = arith.addf %156, %157 : vector<8x32xf32>
    %cst_60 = arith.constant 0.000000e+00 : f32
    %159 = vector.broadcast %cst_60 : f32 to vector<8x32xf32>
    %160 = arith.maximumf %158, %159 : vector<8x32xf32>
    %cst_61 = arith.constant dense<0.000000e+00> : vector<8x1xf32>
    %161 = tpu.matmul %160, %7, %cst_61 {dimension_numbers = #tpu.dot_dimension_numbers<[1], [0], [0], [1], [0, 0, 1, 1], [], []>} : vector<8x32xf32>, vector<32x1xf32>, vector<8x1xf32> -> vector<8x1xf32>
    %162 = vector.broadcast %8 : vector<1x1xf32> to vector<8x1xf32>
    %163 = arith.addf %161, %162 : vector<8x1xf32>
    %164 = tpu.concatenate %44, %61, %78, %95, %112, %129, %146, %163 in 0 : vector<8x1xf32>, vector<8x1xf32>, vector<8x1xf32>, vector<8x1xf32>, vector<8x1xf32>, vector<8x1xf32>, vector<8x1xf32>, vector<8x1xf32> -> vector<64x1xf32>
    %c0_62 = arith.constant 0 : index
    %c0_63 = arith.constant 0 : index
    %c0_64 = arith.constant 0 : index
    %165 = vector.load %arg12[%c0_62, %c0_63, %c0_64] : memref<1x64x1xf32, #tpu.memory_space<vmem>>, vector<1x64x1xf32>
    %166 = vector.shape_cast %165 : vector<1x64x1xf32> to vector<64x1xf32>
    %167 = vector.shape_cast %164 : vector<64x1xf32> to vector<1x64x1xf32>
    tpu.vector_store %arg12[%c0_62, %c0_63, %c0_64], %167 {strides = array<i32>} : memref<1x64x1xf32, #tpu.memory_space<vmem>>, vector<1x64x1xf32>,
    %168 = tpu.concatenate %150, %155 in 0 : vector<8x32xf32>, vector<8x32xf32> -> vector<16x32xf32>
    %c0_65 = arith.constant 0 : index
    %c0_66 = arith.constant 0 : index
    %c0_67 = arith.constant 0 : index
    %169 = vector.load %arg13[%c0_65, %c0_66, %c0_67] : memref<1x16x32xf32, #tpu.memory_space<vmem>>, vector<1x16x32xf32>
    %170 = vector.shape_cast %169 : vector<1x16x32xf32> to vector<16x32xf32>
    %171 = vector.shape_cast %168 : vector<16x32xf32> to vector<1x16x32xf32>
    tpu.vector_store %arg13[%c0_65, %c0_66, %c0_67], %171 {strides = array<i32>} : memref<1x16x32xf32, #tpu.memory_space<vmem>>, vector<1x16x32xf32>,
    return
  }
  func.func @transform_0(%arg0: i32) -> (i32, i32, i32) {
    %c0_i32 = arith.constant 0 : i32
    %c0_i32_0 = arith.constant 0 : i32
    %c0_i32_1 = arith.constant 0 : i32
    return %arg0, %c0_i32, %c0_i32_0 : i32, i32, i32
  }
  func.func @transform_1(%arg0: i32) -> (i32, i32, i32) {
    %c0_i32 = arith.constant 0 : i32
    %c0_i32_0 = arith.constant 0 : i32
    %c0_i32_1 = arith.constant 0 : i32
    return %arg0, %c0_i32, %c0_i32_0 : i32, i32, i32
  }
  func.func @transform_2(%arg0: i32) -> (i32, i32) {
    %c0_i32 = arith.constant 0 : i32
    %c0_i32_0 = arith.constant 0 : i32
    %c0_i32_1 = arith.constant 0 : i32
    return %c0_i32, %c0_i32_0 : i32, i32
  }
  func.func @transform_3(%arg0: i32) -> (i32, i32) {
    %c0_i32 = arith.constant 0 : i32
    %c0_i32_0 = arith.constant 0 : i32
    %c0_i32_1 = arith.constant 0 : i32
    return %c0_i32, %c0_i32_0 : i32, i32
  }
  func.func @transform_4(%arg0: i32) -> (i32, i32) {
    %c0_i32 = arith.constant 0 : i32
    %c0_i32_0 = arith.constant 0 : i32
    %c0_i32_1 = arith.constant 0 : i32
    return %c0_i32, %c0_i32_0 : i32, i32
  }
  func.func @transform_5(%arg0: i32) -> (i32, i32) {
    %c0_i32 = arith.constant 0 : i32
    %c0_i32_0 = arith.constant 0 : i32
    %c0_i32_1 = arith.constant 0 : i32
    return %c0_i32, %c0_i32_0 : i32, i32
  }
  func.func @transform_6(%arg0: i32) -> (i32, i32) {
    %c0_i32 = arith.constant 0 : i32
    %c0_i32_0 = arith.constant 0 : i32
    %c0_i32_1 = arith.constant 0 : i32
    return %c0_i32, %c0_i32_0 : i32, i32
  }
  func.func @transform_7(%arg0: i32) -> (i32, i32) {
    %c0_i32 = arith.constant 0 : i32
    %c0_i32_0 = arith.constant 0 : i32
    %c0_i32_1 = arith.constant 0 : i32
    return %c0_i32, %c0_i32_0 : i32, i32
  }
  func.func @transform_8(%arg0: i32) -> (i32, i32) {
    %c0_i32 = arith.constant 0 : i32
    %c0_i32_0 = arith.constant 0 : i32
    %c0_i32_1 = arith.constant 0 : i32
    return %c0_i32, %c0_i32_0 : i32, i32
  }
  func.func @transform_9(%arg0: i32) -> (i32, i32) {
    %c0_i32 = arith.constant 0 : i32
    %c0_i32_0 = arith.constant 0 : i32
    %c0_i32_1 = arith.constant 0 : i32
    return %c0_i32, %c0_i32_0 : i32, i32
  }
  func.func @transform_10(%arg0: i32) -> (i32, i32) {
    %c0_i32 = arith.constant 0 : i32
    %c0_i32_0 = arith.constant 0 : i32
    %c0_i32_1 = arith.constant 0 : i32
    return %c0_i32, %c0_i32_0 : i32, i32
  }
  func.func @transform_11(%arg0: i32) -> (i32, i32, i32) {
    %c0_i32 = arith.constant 0 : i32
    %c0_i32_0 = arith.constant 0 : i32
    %c0_i32_1 = arith.constant 0 : i32
    return %arg0, %c0_i32, %c0_i32_0 : i32, i32, i32
  }
  func.func @transform_12(%arg0: i32) -> (i32, i32, i32) {
    %c0_i32 = arith.constant 0 : i32
    %c0_i32_0 = arith.constant 0 : i32
    %c0_i32_1 = arith.constant 0 : i32
    return %arg0, %c0_i32, %c0_i32_0 : i32, i32, i32
  }
}

</mosaic_0001>

<bundles_post_ra>
// kernel: tpu_custom_call.1
= control target key start
LH: loop header
LB: loop body
LE: loop exit
PB: predicated region body
PF: predicated region fallthrough
CT: control target
= control target key end

     0   :  { %s4881_s0 = inlined_call_operand.vmem [shape: f32[2,64,2], index: 0, kind: input, shape index: {}]   ;;  %s4882_s1 = inlined_call_operand.vmem [shape: f32[2,16,32], index: 1, kind: input, shape index: {}]   ;;  %s4883_s2 = inlined_call_operand.vmem [shape: f32[2,32], index: 2, kind: input, shape index: {}]   ;;  %s4884_s3 = inlined_call_operand.vmem [shape: f32[32,32], index: 3, kind: input, shape index: {}]   ;;  %s4885_s4 = inlined_call_operand.vmem [shape: f32[1,32], index: 4, kind: input, shape index: {}]   ;;  %s4886_s5 = inlined_call_operand.vmem [shape: f32[64,32], index: 5, kind: input, shape index: {}]   ;;  %s4887_s6 = inlined_call_operand.vmem [shape: f32[1,32], index: 6, kind: input, shape index: {}]   ;;  %s4888_s7 = inlined_call_operand.vmem [shape: f32[32,32], index: 7, kind: input, shape index: {}]   ;;  %s4889_s8 = inlined_call_operand.vmem [shape: f32[1,32], index: 8, kind: input, shape index: {}]   ;;  %s4890_s9 = inlined_call_operand.vmem [shape: f32[32,1], index: 9, kind: input, shape index: {}]   ;;  %s4891_s10 = inlined_call_operand.<no memory space> [shape: f32[1,1], index: 10, kind: input, shape index: {}]   ;;  %s4892_s11 = inlined_call_operand.vmem [shape: f32[2,64,1], index: 11, kind: output, shape index: {0}]   ;;  %s4893_s12 = inlined_call_operand.hbm [shape: f32[2,16,32], index: 12, kind: output, shape index: {1}]  }
   0x1   :  { %4897 = sst [smem:[#allocation6_spill]] %s4881_s0  ;;  %v18_v0 = vstv %s4891_s10 }
   0x2   :  { %19 = vst [vmem:[#allocation2] sm:$0x1] %v18_v0 }
   0x3   :  { %20 = vsyncpa [#allocation4], 0 }
   0x4   :  { %22 = vsyncpa [#allocation4 + $0x1], 0  ;;  %s4289_s23 = smov 0   ;;  %s4291_s24 = smov 0  }
   0x5   :  { %s4293_s25 = smov 0   ;;  %s4295_s26 = smov 0  }
   0x6 LB: > { %s4310_s10 = sadd.s32 4294967295, %s4210_s26   ;;  %s3153_s27 = sadd.s32 4294967294, %s4210_s26   ;;  %s4210_s26 = sphi %s4295_s26, %s4906_s26   ;;  %s4206_s25 = sphi %s4293_s25, %s4905_s25   ;;  %s4202_s24 = sphi %s4291_s24, %s4904_s24   ;;  %s4198_s23 = sphi %s4289_s23, %s4903_s23  }
   0x7   : > { %s4314_s28 = sadd.s32 1, %s4210_s26   ;;  %s302_s29 = sadd.s32 1, %s4206_s25 }
   0x8   : > { %s299_s30 = ssub.s32 %s4210_s26, %s4314_s28  ;;  %p312_p0 = scmp.ne.s32.totalorder %s4206_s25, %s4202_s24 }
   0x9   : > { %p300_p1 = scmp.eq.s32.totalorder %s299_s30, 0  ;;  %p313_p2 = scmp.eq.s32.totalorder %s4310_s10, 1 }
   0xa   : > { %p318_p3 = scmp.ne.s32.totalorder %s4202_s24, %s4198_s23  ;;  %p319_p4 = scmp.eq.s32.totalorder %s3153_s27, 1 }
   0xb   : > { %s4325_s13 = scalar_select %p300_p1, %s4206_s25, %s302_s29  }
   0xc   : > { %p4327_p5 = por %p313_p2, %p312_p0  ;;  %p4331_p6 = por %p319_p4, %p318_p3 }
   0xd   : > { %p3156_p7 = scmp.ge.s32.totalorder %s4210_s26, 1  ;;  %p380_p8 = scmp.lt.s32.totalorder %s4210_s26, 3 }
   0xf   : > { %p381_p9 = pnand %p3156_p7, %p380_p8 }
  0x10   : > { %v448_v1 = vld [vmem:[%s4884_s3] sm:$0xff] (!%p381_p9)  ;;  %v449_v2 = vld [vmem:[%s4884_s3 + $0x8] sm:$0xff] (!%p381_p9)  ;;  %v450_v3 = vld [vmem:[%s4884_s3 + $0x10] sm:$0xff] (!%p381_p9)  ;;  %v4212_v4 = vmov (!%p381_p9), 0.0|0.0   ;;  %vm4213_vm0 = vmmov (!%p381_p9), 0   ;;  %v4214_v7 = vmov (!%p381_p9), 0.0   ;;  %v520_v27 = vlaneseq (!%p381_p9) }
  0x11   : > { %384 = sbr.rel (%p381_p9) target bundleno = 4110 (0x100e), region = 64  ;;  %3817 = vmatprep.subr.bf16.mxu0 (!%p381_p9), %v4212_v4  ;;  %v4347_v5 = vpack.c.bf16 (!%p381_p9), %v449_v2, %v448_v1  ;;  %v451_v6 = vld [vmem:[%s4884_s3 + $0x18] sm:$0xff] (!%p381_p9)  ;;  %3409 = vmatprep.mubr.msk.f32.mxu0 (!%p381_p9), %vm4213_vm0, %v4214_v7  ;;  %p432_p10 = scmp.lt.s32.totalorder (!%p381_p9), %s4310_s10, 1  ;;  %v4215_v8 = vmov (!%p381_p9), 0   ;;  %vm600_vm1 = vcmask (!%p381_p9), 261120   ;;  %v4217_v13 = vmov (!%p381_p9), 1  }
  0x12   : > { %4104 = vset.pattern.permute.xlu0 (!%p381_p9), %v4215_v8  ;;  %3823 = vmatprep.subr.bf16.mxu1 (!%p381_p9), %v4212_v4  ;;  %v4358_v9 = vpack.c.bf16 (!%p381_p9), %v451_v6, %v450_v3  ;;  %s4900_s0 = sld [smem:[#allocation6_spill]] (!%p381_p9)  ;;  %s4895_s27 = smov (!%p381_p9), 32   ;;  %v453_v14 = vld [vmem:[%s4886_s5] sm:$0xff] (!%p381_p9)  ;;  %v454_v15 = vld [vmem:[%s4886_s5 + $0x8] sm:$0xff] (!%p381_p9)  ;;  %v455_v17 = vld [vmem:[%s4886_s5 + $0x10] sm:$0xff] (!%p381_p9)  ;;  %v521_v28 = vshrl.u32 (!%p381_p9), %v520_v27, 7 }
  0x13   : > { %3819 = vmatpush3.bf16.msra.mxu0 (!%p381_p9), %v4347_v5  ;;  %3428 = vmatprep.mubr.msk.f32.mxu1 (!%p381_p9), %vm4213_vm0, %v4214_v7  ;;  %v4393_v16 = vpack.c.bf16 (!%p381_p9), %v454_v15, %v453_v14  ;;  %v456_v18 = vld [vmem:[%s4886_s5 + $0x18] sm:$0xff] (!%p381_p9)  ;;  %v457_v20 = vld [vmem:[%s4886_s5 + $0x20] sm:$0xff] (!%p381_p9)  ;;  %v458_v21 = vld [vmem:[%s4886_s5 + $0x28] sm:$0xff] (!%p381_p9)  ;;  %vm687_vm2 = vcmask (!%p381_p9), 523264   ;;  %vm3021_vm3 = vcmask (!%p381_p9), 7168  }
  0x14   : > { %3820 = vmatprep.subr.bf16.mxu0 (!%p381_p9), %v4212_v4  ;;  %4106 = vset.pattern.permute.xlu1 (!%p381_p9), %v4215_v8  ;;  %v4403_v19 = vpack.c.bf16 (!%p381_p9), %v456_v18, %v455_v17  ;;  %v4413_v22 = vpack.c.bf16 (!%p381_p9), %v458_v21, %v457_v20  ;;  %v459_v23 = vld [vmem:[%s4886_s5 + $0x30] sm:$0xff] (!%p381_p9)  ;;  %v460_v24 = vld [vmem:[%s4886_s5 + $0x38] sm:$0xff] (!%p381_p9)  ;;  %v522_v30 = vsub.s32 (!%p381_p9), 0, %v521_v28  ;;  %v566_v31 = vsub.s32 (!%p381_p9), 1, %v521_v28  ;;  %v447_v32 = vld [vmem:[%s4883_s2] sm:$0x3] (!%p381_p9) }
  0x15   : > { %3825 = vmatpush3.bf16.msra.mxu1 (!%p381_p9), %v4393_v16  ;;  %v4422_v25 = vpack.c.bf16 (!%p381_p9), %v460_v24, %v459_v23  ;;  %v4442_v39 = vld [vmem:[%s4885_s4] ss:$0 sm:$0xff] (!%p381_p9)  ;;  %v463_v48 = vld [vmem:[%s4888_s7 + $0x8] sm:$0xff] (!%p381_p9)  ;;  %v464_v50 = vld [vmem:[%s4888_s7 + $0x10] sm:$0xff] (!%p381_p9) }
  0x16   : > { %3826 = vmatprep.subr.bf16.mxu1 (!%p381_p9), %v4212_v4  ;;  %v4433_v33 = vrot.slane (!%p381_p9), %v447_v32, %v522_v30  ;;  %v4435_v34 = vrot.slane (!%p381_p9), %v447_v32, %v566_v31  ;;  %v462_v47 = vld [vmem:[%s4888_s7] sm:$0xff] (!%p381_p9)  ;;  %v465_v51 = vld [vmem:[%s4888_s7 + $0x18] sm:$0xff] (!%p381_p9)  ;;  %v468_v62 = vld [vmem:[%s4890_s9 + $0x8] sm:$0xff] (!%p381_p9) }
  0x17   : > { %3822 = vmatpush3.bf16.msra.mxu0 (!%p381_p9), %v4358_v9  ;;  %v4462_v49 = vpack.c.bf16 (!%p381_p9), %v463_v48, %v462_v47  ;;  %v4474_v52 = vpack.c.bf16 (!%p381_p9), %v465_v51, %v464_v50  ;;  %v4485_v54 = vld [vmem:[%s4887_s6] ss:$0 sm:$0xff] (!%p381_p9)  ;;  %v469_v0 = vld [vmem:[%s4890_s9 + $0x10] sm:$0xff] (!%p381_p9)  ;;  %v470_v1 = vld [vmem:[%s4890_s9 + $0x18] sm:$0xff] (!%p381_p9) }
  0x18   : > { %s4361_s29 = scalar_select %p432_p10, %s4310_s10, 1  ;;  %3835 = vmatprep.subr.bf16.mxu0 %v4212_v4  ;;  %v467_v61 = vld [vmem:[%s4890_s9] sm:$0xff]  ;;  %v4509_v2 = vpack.c.bf16 %v470_v1, %v469_v0 }
  0x19   : > { %3828 = vmatpush3.bf16.msra.mxu1 %v4403_v19  ;;  %v4498_v63 = vpack.c.bf16 %v468_v62, %v467_v61  ;;  %v4518_v14 = vld [vmem:[%s4889_s8] ss:$0 sm:$0xff] }
  0x1a   : > { %s4894_s30 = sshll.u32 %s4361_s29, 6  ;;  %s3206_s16 = sshll.u32 %s4361_s29, 4  ;;  %3829 = vmatprep.subr.bf16.mxu1 %v4212_v4  ;;  %v4548_v28 = vld [vmem:[#allocation2] ss:$0 sm:$0xff] }
  0x1b   : > { %s4374_s19 = scalar_lea.vmem %s4900_s0, %s4894_s30  ;;  %s441_s22 = scalar_lea.vmem %s4882_s1, %s3206_s16 }
  0x1c   : > { %v598_v10 = vld [vmem:[%s441_s22] sm:$0xff]  ;;  %v599_v12 = vld [vmem:[%s441_s22 + $0x8] sm:$0xff]  ;;  %v474_v53 = vld [vmem:[%s4374_s19 + $0x10] sm:$0xff]  ;;  %s4901_s30 = smov 32   ;;  %s4902_s0 = sshll.u32 %s4361_s29, 6 }
  0x1d   : > { %v472_v11 = vld [vmem:[%s4374_s19] sm:$0xff]  ;;  %677 = vrot.lane.b32.xlu1 %v599_v12, %s4895_s27  ;;  %3410 = vmatmul.mubr.msk.f32.vlgmr.msra.gmra.mrb[0].mxu0 %vm600_vm1, %v598_v10  ;;  %v473_v26 = vld [vmem:[%s4374_s19 + $0x8] sm:$0xff]  ;;  %s4555_s20 = scalar_lea.vmem %s4892_s11, %s4902_s0  ;;  %s429_s29 = sand.u32 1, %s4202_s24  }
  0x1e   : > { %482 = vperm.xlu0 %4104, %v472_v11   ;;  %3439 = vmatprep.mubr.msk.f32.mxu0 %vm4213_vm0, %v4214_v7  ;;  %s4837_s17 = scalar_lea.sflag [#allocation4], %s429_s29 }
  0x1f   : > { %3831 = vmatpush3.bf16.msra.mxu1 %v4413_v22  ;;  %3837 = vmatpush3.bf16.msra.mxu0 %v4462_v49 }
  0x20   : > { %3832 = vmatprep.subr.bf16.mxu1 %v4212_v4  ;;  %3838 = vmatprep.subr.bf16.mxu0 %v4212_v4 }
  0x21   : > { %487 = vperm.xlu1 %4106, %v473_v26  }
  0x22   : > { %4105 = vset.pattern.permute.xlu0 %v4217_v13 }
  0x23   : > { %533 = vperm.xlu0 %4105, %v472_v11   ;;  %3834 = vmatpush3.bf16.msra.mxu1 %v4422_v25 }
  0x24   : > { %3847 = vmatprep.subr.bf16.mxu1 %v4212_v4  ;;  %3840 = vmatpush3.bf16.msra.mxu0 %v4474_v52 }
  0x25   : > { %4107 = vset.pattern.permute.xlu1 %v4217_v13  ;;  %3841 = vmatprep.subr.bf16.mxu0 %v4212_v4 }
  0x26   : > { %537 = vperm.xlu1 %4107, %v473_v26  }
  0x2a   : > { %4108 = vset.pattern.permute.xlu1 %v4215_v8 }
  0x2b   : > { %492 = vperm.xlu1 %4108, %v474_v53  }
  0x2f   : > { %4110 = vset.pattern.permute.xlu1 %v4217_v13 }
  0x8f   : > { %v678_v44 = vpop.permute.xlu1 %677 }
  0x9d   : > { %v483_v29 = vpop.permute.xlu0 %482 }
  0x9e   : > { %v524_v36 = vmul.f32 %v4433_v33, %v483_v29 }
  0xa0   : > { %v488_v3 = vpop.permute.xlu1 %487 }
  0xa1   : > { %v525_v10 = vmul.f32 %v4433_v33, %v488_v3 }
  0xa2   : > { %v534_v35 = vpop.permute.xlu0 %533 }
  0xa3   : > { %v568_v37 = vmul.f32 %v4435_v34, %v534_v35 }
  0xa5   : > { %v576_v38 = vadd.f32 %v568_v37, %v524_v36  ;;  %v538_v6 = vpop.permute.xlu1 %537 }
  0xa6   : > { %v569_v11 = vmul.f32 %v4435_v34, %v538_v6 }
  0xa7   : > { %v590_v40 = vadd.f32 %v4442_v39, %v576_v38 }
  0xa8   : > { %v577_v12 = vadd.f32 %v569_v11, %v525_v10 }
  0xaa   : > { %v591_v17 = vadd.f32 %v4442_v39, %v577_v12 }
  0xf0   : > { %v670_v41 = vpop.f32.mrb[0].mxu0 }
  0xf1   : > { %v674_v42 = vadd.f32 %v670_v41, %v590_v40  ;;  %v3411_v43 = vpop.f32.mrb[1].mxu0  ;;  %v475_v41 = vld [vmem:[%s4374_s19 + $0x18] sm:$0xff] }
  0xf3   : > { %4116 = vtanh.f32 %v674_v42  ;;  %v493_v42 = vpop.permute.xlu1 %492 }
  0xfd   : > { %v4117_v45 = vpop.eup %4116 }
  0xfe   : > { %v680_v46 = vsel %vm600_vm1, %v4117_v45, %v678_v44  ;;  %v526_v44 = vmul.f32 %v4433_v33, %v493_v42 }
  0xff   : > { %3429 = vmatmul.mubr.msk.f32.vlgmr.msra.gmra.mrb[0].mxu1 %vm687_vm2, %v680_v46 }
 0x100   : > { %3849 = vmatpush3.bf16.msra.mxu1 %v4347_v5  ;;  %3461 = vmatprep.mubr.msk.f32.mxu1 %vm4213_vm0, %v4214_v7 }
 0x101   : > { %3850 = vmatprep.subr.bf16.mxu1 %v4212_v4 }
 0x104   : > { %3852 = vmatpush3.bf16.msra.mxu1 %v4358_v9 }
 0x105   : > { %3865 = vmatprep.subr.bf16.mxu1 %v4212_v4 }
 0x107   : > { %3462 = vmatmul.mubr.msk.f32.vlgmr.msra.gmra.mrb[2].mxu1 %vm600_vm1, %v4117_v45 }
 0x108   : > { %3491 = vmatprep.mubr.msk.f32.mxu1 %vm4213_vm0, %v4214_v7  ;;  %3867 = vmatpush3.bf16.msra.mxu1 %v4462_v49 }
 0x109   : > { %3868 = vmatprep.subr.bf16.mxu1 %v4212_v4 }
 0x10c   : > { %3870 = vmatpush3.bf16.msra.mxu1 %v4474_v52 }
 0x10d   : > { %3871 = vmatprep.subr.bf16.mxu1 %v4212_v4 }
 0x1d2   : > { %v757_v55 = vpop.f32.mrb[0].mxu1 }
 0x1d3   : > { %v758_v56 = vadd.f32 %v4485_v54, %v757_v55  ;;  %v3430_v57 = vpop.f32.mrb[1].mxu1 }
 0x1d5   : > { %4118 = vtanh.f32 %v758_v56 }
 0x1da   : > { %v990_v58 = vpop.f32.mrb[2].mxu1 }
 0x1db   : > { %v3463_v59 = vpop.f32.mrb[3].mxu1  ;;  %v994_v23 = vadd.f32 %v990_v58, %v591_v17 }
 0x1dc   : > { %v476_v59 = vld [vmem:[%s4374_s19 + $0x20] sm:$0xff] }
 0x1dd   : > { %4120 = vtanh.f32 %v994_v23 }
 0x1df   : > { %v4119_v60 = vpop.eup %4118 }
 0x1e0   : > { %996 = vrot.lane.b32.xlu0 %v4119_v60, %s4901_s30  ;;  %3440 = vmatmul.mubr.msk.f32.vlgmr.msra.gmra.mrb[2].mxu0 %vm600_vm1, %v4119_v60 }
 0x1e1   : > { %3450 = vmatprep.mubr.msk.f32.mxu0 %vm4213_vm0, %v4214_v7  ;;  %3843 = vmatpush3.bf16.msra.mxu0 %v4498_v63 }
 0x1e2   : > { %3844 = vmatprep.subr.bf16.mxu0 %v4212_v4 }
 0x1e4   : > { %541 = vperm.xlu0 %4105, %v474_v53  }
 0x1e5   : > { %3846 = vmatpush3.bf16.msra.mxu0 %v4509_v2 }
 0x1e6   : > { %3853 = vmatprep.subr.bf16.mxu0 %v4212_v4 }
 0x1e7   : > { %v4121_v26 = vpop.eup %4120 }
 0x1e8   : > { %4109 = vset.pattern.permute.xlu0 %v4215_v8 }
 0x1e9   : > { %497 = vperm.xlu0 %4109, %v475_v41  }
 0x1ed   : > { %502 = vperm.xlu0 %4109, %v476_v59  }
 0x1f1   : > { %4112 = vset.pattern.permute.xlu0 %v4217_v13 }
 0x252   : > { %v997_v24 = vpop.permute.xlu0 %996 }
 0x253   : > { %v999_v27 = vsel %vm600_vm1, %v4121_v26, %v997_v24 }
 0x263   : > { %v542_v43 = vpop.permute.xlu0 %541 }
 0x264   : > { %v570_v45 = vmul.f32 %v4435_v34, %v542_v43 }
 0x266   : > { %v578_v46 = vadd.f32 %v570_v45, %v526_v44  ;;  %v477_v45 = vld [vmem:[%s4374_s19 + $0x28] sm:$0xff] }
 0x268   : > { %v592_v51 = vadd.f32 %v4442_v39, %v578_v46  ;;  %v498_v12 = vpop.permute.xlu0 %497 }
 0x269   : > { %v527_v17 = vmul.f32 %v4433_v33, %v498_v12 }
 0x26c   : > { %v503_v46 = vpop.permute.xlu0 %502 }
 0x2b3   : > { %v837_v15 = vpop.f32.mrb[2].mxu0 }
 0x2b4   : > { %v838_v18 = vadd.f32 %v4518_v14, %v837_v15  ;;  %v3441_v20 = vpop.f32.mrb[3].mxu0 }
 0x2b6   : > { %v841_v21 = vmax.f32 %v838_v18, 0.0 }
 0x2b8   : > { %3451 = vmatmul.mubr.msk.f32.vlgmr.msra.gmra.mrb[4].mxu0 %vm600_vm1, %v841_v21 }
 0x2b9   : > { %3855 = vmatpush3.bf16.msra.mxu0 %v4393_v16  ;;  %3480 = vmatprep.mubr.msk.f32.mxu0 %vm4213_vm0, %v4214_v7 }
 0x2ba   : > { %3856 = vmatprep.subr.bf16.mxu0 %v4212_v4 }
 0x2bd   : > { %3858 = vmatpush3.bf16.msra.mxu0 %v4403_v19 }
 0x2be   : > { %3859 = vmatprep.subr.bf16.mxu0 %v4212_v4 }
 0x2c1   : > { %3861 = vmatpush3.bf16.msra.mxu0 %v4413_v22 }
 0x2c2   : > { %3862 = vmatprep.subr.bf16.mxu0 %v4212_v4 }
 0x2c5   : > { %3864 = vmatpush3.bf16.msra.mxu0 %v4422_v25 }
 0x2c6   : > { %3877 = vmatprep.subr.bf16.mxu0 %v4212_v4 }
 0x2c8   : > { %3481 = vmatmul.mubr.msk.f32.vlgmr.msra.gmra.mrb[6].mxu0 %vm687_vm2, %v999_v27 }
 0x2c9   : > { %3879 = vmatpush3.bf16.msra.mxu0 %v4347_v5  ;;  %3513 = vmatprep.mubr.msk.f32.mxu0 %vm4213_vm0, %v4214_v7 }
 0x2ca   : > { %3880 = vmatprep.subr.bf16.mxu0 %v4212_v4 }
 0x2cd   : > { %3882 = vmatpush3.bf16.msra.mxu0 %v4358_v9 }
 0x2ce   : > { %3895 = vmatprep.subr.bf16.mxu0 %v4212_v4 }
 0x2d0   : > { %3514 = vmatmul.mubr.msk.f32.vlgmr.msra.gmra.mrb[8].mxu0 %vm600_vm1, %v4121_v26 }
 0x2d1   : > { %3897 = vmatpush3.bf16.msra.mxu0 %v4462_v49  ;;  %3543 = vmatprep.mubr.msk.f32.mxu0 %vm4213_vm0, %v4214_v7 }
 0x2d2   : > { %3898 = vmatprep.subr.bf16.mxu0 %v4212_v4 }
 0x2d5   : > { %3900 = vmatpush3.bf16.msra.mxu0 %v4474_v52 }
 0x2d6   : > { %3901 = vmatprep.subr.bf16.mxu0 %v4212_v4 }
 0x38b   : > { %v917_v29 = vpop.f32.mrb[4].mxu0 }
 0x38c   : > { %v918_v30 = vadd.f32 %v4548_v28, %v917_v29  ;;  %v3452_v31 = vpop.f32.mrb[5].mxu0 }
 0x38e   : > { %3022 = vst.msk [vmem:[%s4555_s20] sm:$0xff] %vm3021_vm3, %v918_v30 }
 0x39b   : > { %v1069_v32 = vpop.f32.mrb[6].mxu0 }
 0x39c   : > { %v1070_v35 = vadd.f32 %v4485_v54, %v1069_v32  ;;  %v3482_v36 = vpop.f32.mrb[7].mxu0 }
 0x39e   : > { %4122 = vtanh.f32 %v1070_v35 }
 0x3a3   : > { %v1290_v37 = vpop.f32.mrb[8].mxu0 }
 0x3a4   : > { %v3515_v38 = vpop.f32.mrb[9].mxu0  ;;  %v1294_v55 = vadd.f32 %v1290_v37, %v592_v51 }
 0x3a6   : > { %4124 = vtanh.f32 %v1294_v55 }
 0x3a8   : > { %v4123_v40 = vpop.eup %4122 }
 0x3a9   : > { %1296 = vrot.lane.b32.xlu1 %v4123_v40, %s4901_s30  ;;  %3492 = vmatmul.mubr.msk.f32.vlgmr.msra.gmra.mrb[4].mxu1 %vm600_vm1, %v4123_v40 }
 0x3aa   : > { %3873 = vmatpush3.bf16.msra.mxu1 %v4498_v63  ;;  %3502 = vmatprep.mubr.msk.f32.mxu1 %vm4213_vm0, %v4214_v7 }
 0x3ab   : > { %3874 = vmatprep.subr.bf16.mxu1 %v4212_v4 }
 0x3ad   : > { %545 = vperm.xlu1 %4110, %v475_v41  }
 0x3ae   : > { %3876 = vmatpush3.bf16.msra.mxu1 %v4509_v2 }
 0x3af   : > { %3883 = vmatprep.subr.bf16.mxu1 %v4212_v4 }
 0x3b0   : > { %v4125_v57 = vpop.eup %4124 }
 0x41b   : > { %v1297_v56 = vpop.permute.xlu1 %1296 }
 0x41c   : > { %v1299_v58 = vsel %vm600_vm1, %v4125_v57, %v1297_v56 }
 0x42c   : > { %v546_v15 = vpop.permute.xlu1 %545 }
 0x42d   : > { %v571_v18 = vmul.f32 %v4435_v34, %v546_v15 }
 0x42f   : > { %v579_v20 = vadd.f32 %v571_v18, %v527_v17 }
 0x431   : > { %v593_v23 = vadd.f32 %v4442_v39, %v579_v20 }
 0x47c   : > { %v1143_v47 = vpop.f32.mrb[4].mxu1 }
 0x47d   : > { %v1144_v48 = vadd.f32 %v4518_v14, %v1143_v47  ;;  %v3493_v50 = vpop.f32.mrb[5].mxu1 }
 0x47f   : > { %v1147_v53 = vmax.f32 %v1144_v48, 0.0  ;;  %v528_v48 = vmul.f32 %v4433_v33, %v503_v46 }
 0x481   : > { %3503 = vmatmul.mubr.msk.f32.vlgmr.msra.gmra.mrb[6].mxu1 %vm600_vm1, %v1147_v53 }
 0x482   : > { %3885 = vmatpush3.bf16.msra.mxu1 %v4393_v16  ;;  %3532 = vmatprep.mubr.msk.f32.mxu1 %vm4213_vm0, %v4214_v7 }
 0x483   : > { %3886 = vmatprep.subr.bf16.mxu1 %v4212_v4 }
 0x486   : > { %3888 = vmatpush3.bf16.msra.mxu1 %v4403_v19 }
 0x487   : > { %3889 = vmatprep.subr.bf16.mxu1 %v4212_v4 }
 0x48a   : > { %3891 = vmatpush3.bf16.msra.mxu1 %v4413_v22 }
 0x48b   : > { %3892 = vmatprep.subr.bf16.mxu1 %v4212_v4 }
 0x48e   : > { %3894 = vmatpush3.bf16.msra.mxu1 %v4422_v25 }
 0x48f   : > { %3907 = vmatprep.subr.bf16.mxu1 %v4212_v4 }
 0x491   : > { %3533 = vmatmul.mubr.msk.f32.vlgmr.msra.gmra.mrb[8].mxu1 %vm687_vm2, %v1299_v58 }
 0x492   : > { %3909 = vmatpush3.bf16.msra.mxu1 %v4347_v5  ;;  %3565 = vmatprep.mubr.msk.f32.mxu1 %vm4213_vm0, %v4214_v7 }
 0x493   : > { %3910 = vmatprep.subr.bf16.mxu1 %v4212_v4 }
 0x496   : > { %3912 = vmatpush3.bf16.msra.mxu1 %v4358_v9 }
 0x497   : > { %3925 = vmatprep.subr.bf16.mxu1 %v4212_v4 }
 0x499   : > { %3566 = vmatmul.mubr.msk.f32.vlgmr.msra.gmra.mrb[10].mxu1 %vm600_vm1, %v4125_v57 }
 0x49a   : > { %3927 = vmatpush3.bf16.msra.mxu1 %v4462_v49  ;;  %3595 = vmatprep.mubr.msk.f32.mxu1 %vm4213_vm0, %v4214_v7 }
 0x49b   : > { %3928 = vmatprep.subr.bf16.mxu1 %v4212_v4 }
 0x49e   : > { %3930 = vmatpush3.bf16.msra.mxu1 %v4474_v52 }
 0x49f   : > { %3931 = vmatprep.subr.bf16.mxu1 %v4212_v4 }
 0x554   : > { %v1217_v60 = vpop.f32.mrb[6].mxu1 }
 0x555   : > { %v1218_v61 = vadd.f32 %v4548_v28, %v1217_v60  ;;  %v3504_v62 = vpop.f32.mrb[7].mxu1 }
 0x557   : > { %3023 = vst.msk [vmem:[%s4555_s20 + $0x8] sm:$0xff] %vm3021_vm3, %v1218_v61 }
 0x564   : > { %v1369_v0 = vpop.f32.mrb[8].mxu1 }
 0x565   : > { %v1370_v1 = vadd.f32 %v4485_v54, %v1369_v0  ;;  %v3534_v3 = vpop.f32.mrb[9].mxu1  ;;  %v478_v0 = vld [vmem:[%s4374_s19 + $0x30] sm:$0xff] }
 0x567   : > { %4126 = vtanh.f32 %v1370_v1 }
 0x56c   : > { %v1590_v6 = vpop.f32.mrb[10].mxu1 }
 0x56d   : > { %v3567_v10 = vpop.f32.mrb[11].mxu1  ;;  %v1594_v29 = vadd.f32 %v1590_v6, %v593_v23 }
 0x56f   : > { %4128 = vtanh.f32 %v1594_v29 }
 0x571   : > { %v4127_v11 = vpop.eup %4126 }
 0x572   : > { %1596 = vrot.lane.b32.xlu1 %v4127_v11, %s4901_s30  ;;  %3544 = vmatmul.mubr.msk.f32.vlgmr.msra.gmra.mrb[10].mxu0 %vm600_vm1, %v4127_v11 }
 0x573   : > { %3903 = vmatpush3.bf16.msra.mxu0 %v4498_v63  ;;  %3554 = vmatprep.mubr.msk.f32.mxu0 %vm4213_vm0, %v4214_v7 }
 0x574   : > { %3904 = vmatprep.subr.bf16.mxu0 %v4212_v4 }
 0x576   : > { %549 = vperm.xlu1 %4110, %v476_v59  }
 0x577   : > { %3906 = vmatpush3.bf16.msra.mxu0 %v4509_v2 }
 0x578   : > { %3913 = vmatprep.subr.bf16.mxu0 %v4212_v4 }
 0x579   : > { %v4129_v31 = vpop.eup %4128 }
 0x57a   : > { %4111 = vset.pattern.permute.xlu1 %v4215_v8 }
 0x57b   : > { %507 = vperm.xlu1 %4111, %v477_v45  }
 0x5e4   : > { %v1597_v30 = vpop.permute.xlu1 %1596 }
 0x5e5   : > { %v1599_v32 = vsel %vm600_vm1, %v4129_v31, %v1597_v30 }
 0x5f5   : > { %v550_v47 = vpop.permute.xlu1 %549 }
 0x5f6   : > { %v572_v50 = vmul.f32 %v4435_v34, %v550_v47 }
 0x5f8   : > { %v580_v51 = vadd.f32 %v572_v50, %v528_v48  ;;  %v479_v48 = vld [vmem:[%s4374_s19 + $0x38] sm:$0xff]  ;;  %s3157_s19 = sshll.u32 %s429_s29, 4 }
 0x5f9   : > { %s4795_s21 = scalar_lea.vmem [#allocation3], %s3157_s19 }
 0x5fa   : > { %v594_v57 = vadd.f32 %v4442_v39, %v580_v51  ;;  %s3054_s22 = sshll.u32 %s4795_s21, 4  ;;  %s4833_s22 = int_to_ptr.vmem [resolvable:$true] %s3054_s22 }
 0x5fb   : > { %s4148_s18 = scalar_lea.vmem %s4833_s22, 256 }
 0x5fc   : > { %p4149_p11 = scmp.ne.s32.totalorder %s4833_s22, %s4148_s18 }
 0x5fe   : > { %p4150_p12 = pnand %p4149_p11, %p4327_p5 }
 0x600   : > { %p4151_p13 = pneg %p4150_p12 }
 0x645   : > { %v1443_v21 = vpop.f32.mrb[10].mxu0 }
 0x646   : > { %v1444_v24 = vadd.f32 %v4518_v14, %v1443_v21  ;;  %v3545_v26 = vpop.f32.mrb[11].mxu0 }
 0x648   : > { %v1447_v27 = vmax.f32 %v1444_v24, 0.0 }
 0x64a   : > { %3555 = vmatmul.mubr.msk.f32.vlgmr.msra.gmra.mrb[12].mxu0 %vm600_vm1, %v1447_v27 }
 0x64b   : > { %3915 = vmatpush3.bf16.msra.mxu0 %v4393_v16  ;;  %3584 = vmatprep.mubr.msk.f32.mxu0 %vm4213_vm0, %v4214_v7 }
 0x64c   : > { %3916 = vmatprep.subr.bf16.mxu0 %v4212_v4 }
 0x64f   : > { %3918 = vmatpush3.bf16.msra.mxu0 %v4403_v19 }
 0x650   : > { %3919 = vmatprep.subr.bf16.mxu0 %v4212_v4 }
 0x653   : > { %3921 = vmatpush3.bf16.msra.mxu0 %v4413_v22 }
 0x654   : > { %3922 = vmatprep.subr.bf16.mxu0 %v4212_v4 }
 0x657   : > { %3924 = vmatpush3.bf16.msra.mxu0 %v4422_v25 }
 0x658   : > { %3937 = vmatprep.subr.bf16.mxu0 %v4212_v4 }
 0x65a   : > { %3585 = vmatmul.mubr.msk.f32.vlgmr.msra.gmra.mrb[14].mxu0 %vm687_vm2, %v1599_v32 }
 0x65b   : > { %3939 = vmatpush3.bf16.msra.mxu0 %v4347_v5  ;;  %3617 = vmatprep.mubr.msk.f32.mxu0 %vm4213_vm0, %v4214_v7 }
 0x65c   : > { %3940 = vmatprep.subr.bf16.mxu0 %v4212_v4 }
 0x65f   : > { %3942 = vmatpush3.bf16.msra.mxu0 %v4358_v9 }
 0x660   : > { %3955 = vmatprep.subr.bf16.mxu0 %v4212_v4 }
 0x662   : > { %3618 = vmatmul.mubr.msk.f32.vlgmr.msra.gmra.mrb[16].mxu0 %vm600_vm1, %v4129_v31 }
 0x663   : > { %3957 = vmatpush3.bf16.msra.mxu0 %v4462_v49  ;;  %3647 = vmatprep.mubr.msk.f32.mxu0 %vm4213_vm0, %v4214_v7 }
 0x664   : > { %3958 = vmatprep.subr.bf16.mxu0 %v4212_v4 }
 0x667   : > { %3960 = vmatpush3.bf16.msra.mxu0 %v4474_v52 }
 0x668   : > { %3961 = vmatprep.subr.bf16.mxu0 %v4212_v4 }
 0x71d   : > { %v1517_v35 = vpop.f32.mrb[12].mxu0 }
 0x71e   : > { %v1518_v36 = vadd.f32 %v4548_v28, %v1517_v35  ;;  %v3556_v37 = vpop.f32.mrb[13].mxu0 }
 0x720   : > { %3024 = vst.msk [vmem:[%s4555_s20 + $0x10] sm:$0xff] %vm3021_vm3, %v1518_v36 }
 0x72d   : > { %v1669_v38 = vpop.f32.mrb[14].mxu0 }
 0x72e   : > { %v1670_v40 = vadd.f32 %v4485_v54, %v1669_v38  ;;  %v3586_v41 = vpop.f32.mrb[15].mxu0 }
 0x730   : > { %4130 = vtanh.f32 %v1670_v40 }
 0x735   : > { %v1890_v42 = vpop.f32.mrb[16].mxu0 }
 0x736   : > { %v3619_v43 = vpop.f32.mrb[17].mxu0  ;;  %v1894_v59 = vadd.f32 %v1890_v42, %v594_v57 }
 0x738   : > { %4132 = vtanh.f32 %v1894_v59 }
 0x73a   : > { %v4131_v44 = vpop.eup %4130 }
 0x73b   : > { %1896 = vrot.lane.b32.xlu0 %v4131_v44, %s4901_s30  ;;  %3596 = vmatmul.mubr.msk.f32.vlgmr.msra.gmra.mrb[12].mxu1 %vm600_vm1, %v4131_v44 }
 0x73c   : > { %3933 = vmatpush3.bf16.msra.mxu1 %v4498_v63  ;;  %3606 = vmatprep.mubr.msk.f32.mxu1 %vm4213_vm0, %v4214_v7 }
 0x73d   : > { %3934 = vmatprep.subr.bf16.mxu1 %v4212_v4 }
 0x73f   : > { %553 = vperm.xlu0 %4112, %v477_v45  }
 0x740   : > { %3936 = vmatpush3.bf16.msra.mxu1 %v4509_v2 }
 0x741   : > { %3943 = vmatprep.subr.bf16.mxu1 %v4212_v4 }
 0x742   : > { %v4133_v61 = vpop.eup %4132 }
 0x743   : > { %557 = vperm.xlu0 %4112, %v478_v0  }
 0x747   : > { %4113 = vset.pattern.permute.xlu0 %v4215_v8  ;;  %v508_v8 = vpop.permute.xlu1 %507 }
 0x748   : > { %v529_v21 = vmul.f32 %v4433_v33, %v508_v8  ;;  %517 = vperm.xlu0 %4113, %v479_v48  }
 0x74c   : > { %4115 = vset.pattern.permute.xlu0 %v4217_v13 }
 0x7ad   : > { %v1897_v60 = vpop.permute.xlu0 %1896 }
 0x7ae   : > { %v1899_v62 = vsel %vm600_vm1, %v4133_v61, %v1897_v60 }
 0x7be   : > { %v554_v20 = vpop.permute.xlu0 %553 }
 0x7bf   : > { %v573_v23 = vmul.f32 %v4435_v34, %v554_v20 }
 0x7c1   : > { %v581_v24 = vadd.f32 %v573_v23, %v529_v21 }
 0x7c2   : > { %v558_v50 = vpop.permute.xlu0 %557 }
 0x7c3   : > { %v595_v27 = vadd.f32 %v4442_v39, %v581_v24 }
 0x80e   : > { %v1743_v53 = vpop.f32.mrb[12].mxu1 }
 0x80f   : > { %v1744_v55 = vadd.f32 %v4518_v14, %v1743_v53  ;;  %v3597_v56 = vpop.f32.mrb[13].mxu1  ;;  %v574_v53 = vmul.f32 %v4435_v34, %v558_v50 }
 0x811   : > { %v1747_v58 = vmax.f32 %v1744_v55, 0.0 }
 0x813   : > { %3607 = vmatmul.mubr.msk.f32.vlgmr.msra.gmra.mrb[14].mxu1 %vm600_vm1, %v1747_v58 }
 0x814   : > { %3945 = vmatpush3.bf16.msra.mxu1 %v4393_v16  ;;  %3636 = vmatprep.mubr.msk.f32.mxu1 %vm4213_vm0, %v4214_v7 }
 0x815   : > { %3946 = vmatprep.subr.bf16.mxu1 %v4212_v4 }
 0x818   : > { %3948 = vmatpush3.bf16.msra.mxu1 %v4403_v19 }
 0x819   : > { %3949 = vmatprep.subr.bf16.mxu1 %v4212_v4 }
 0x81c   : > { %3951 = vmatpush3.bf16.msra.mxu1 %v4413_v22 }
 0x81d   : > { %3952 = vmatprep.subr.bf16.mxu1 %v4212_v4 }
 0x820   : > { %3954 = vmatpush3.bf16.msra.mxu1 %v4422_v25 }
 0x821   : > { %3967 = vmatprep.subr.bf16.mxu1 %v4212_v4 }
 0x823   : > { %3637 = vmatmul.mubr.msk.f32.vlgmr.msra.gmra.mrb[16].mxu1 %vm687_vm2, %v1899_v62 }
 0x824   : > { %3969 = vmatpush3.bf16.msra.mxu1 %v4347_v5  ;;  %3669 = vmatprep.mubr.msk.f32.mxu1 %vm4213_vm0, %v4214_v7 }
 0x825   : > { %3970 = vmatprep.subr.bf16.mxu1 %v4212_v4 }
 0x828   : > { %3972 = vmatpush3.bf16.msra.mxu1 %v4358_v9 }
 0x829   : > { %3985 = vmatprep.subr.bf16.mxu1 %v4212_v4 }
 0x82b   : > { %3670 = vmatmul.mubr.msk.f32.vlgmr.msra.gmra.mrb[18].mxu1 %vm600_vm1, %v4133_v61 }
 0x82c   : > { %3987 = vmatpush3.bf16.msra.mxu1 %v4462_v49  ;;  %3699 = vmatprep.mubr.msk.f32.mxu1 %vm4213_vm0, %v4214_v7 }
 0x82d   : > { %3988 = vmatprep.subr.bf16.mxu1 %v4212_v4 }
 0x830   : > { %3990 = vmatpush3.bf16.msra.mxu1 %v4474_v52 }
 0x831   : > { %3991 = vmatprep.subr.bf16.mxu1 %v4212_v4 }
 0x8e6   : > { %v1817_v1 = vpop.f32.mrb[14].mxu1 }
 0x8e7   : > { %v1818_v3 = vadd.f32 %v4548_v28, %v1817_v1  ;;  %v3608_v6 = vpop.f32.mrb[15].mxu1 }
 0x8e9   : > { %3025 = vst.msk [vmem:[%s4555_s20 + $0x18] sm:$0xff] %vm3021_vm3, %v1818_v3 }
 0x8f6   : > { %v1969_v10 = vpop.f32.mrb[16].mxu1 }
 0x8f7   : > { %v1970_v11 = vadd.f32 %v4485_v54, %v1969_v10  ;;  %v3638_v12 = vpop.f32.mrb[17].mxu1 }
 0x8f9   : > { %4134 = vtanh.f32 %v1970_v11 }
 0x8fe   : > { %v2190_v15 = vpop.f32.mrb[18].mxu1 }
 0x8ff   : > { %v3671_v17 = vpop.f32.mrb[19].mxu1  ;;  %v2194_v32 = vadd.f32 %v2190_v15, %v595_v27 }
 0x901   : > { %4136 = vtanh.f32 %v2194_v32 }
 0x903   : > { %v4135_v18 = vpop.eup %4134 }
 0x904   : > { %2196 = vrot.lane.b32.xlu1 %v4135_v18, %s4901_s30  ;;  %3648 = vmatmul.mubr.msk.f32.vlgmr.msra.gmra.mrb[18].mxu0 %vm600_vm1, %v4135_v18 }
 0x905   : > { %3963 = vmatpush3.bf16.msra.mxu0 %v4498_v63  ;;  %3658 = vmatprep.mubr.msk.f32.mxu0 %vm4213_vm0, %v4214_v7 }
 0x906   : > { %3964 = vmatprep.subr.bf16.mxu0 %v4212_v4 }
 0x908   : > { %512 = vperm.xlu1 %4111, %v478_v0  }
 0x909   : > { %3966 = vmatpush3.bf16.msra.mxu0 %v4509_v2 }
 0x90a   : > { %3973 = vmatprep.subr.bf16.mxu0 %v4212_v4 }
 0x90b   : > { %v4137_v36 = vpop.eup %4136 }
 0x90c   : > { %4114 = vset.pattern.permute.xlu1 %v4217_v13 }
 0x976   : > { %v2197_v35 = vpop.permute.xlu1 %2196 }
 0x977   : > { %v2199_v37 = vsel %vm600_vm1, %v4137_v36, %v2197_v35 }
 0x987   : > { %v513_v51 = vpop.permute.xlu1 %512 }
 0x988   : > { %v530_v55 = vmul.f32 %v4433_v33, %v513_v51 }
 0x98a   : > { %v582_v56 = vadd.f32 %v574_v53, %v530_v55 }
 0x98c   : > { %v596_v60 = vadd.f32 %v4442_v39, %v582_v56 }
 0x9d7   : > { %v2043_v26 = vpop.f32.mrb[18].mxu0 }
 0x9d8   : > { %v2044_v29 = vadd.f32 %v4518_v14, %v2043_v26  ;;  %v3649_v30 = vpop.f32.mrb[19].mxu0 }
 0x9da   : > { %v2047_v31 = vmax.f32 %v2044_v29, 0.0 }
 0x9dc   : > { %3659 = vmatmul.mubr.msk.f32.vlgmr.msra.gmra.mrb[20].mxu0 %vm600_vm1, %v2047_v31 }
 0x9dd   : > { %3975 = vmatpush3.bf16.msra.mxu0 %v4393_v16  ;;  %3688 = vmatprep.mubr.msk.f32.mxu0 %vm4213_vm0, %v4214_v7 }
 0x9de   : > { %3976 = vmatprep.subr.bf16.mxu0 %v4212_v4 }
 0x9e1   : > { %3978 = vmatpush3.bf16.msra.mxu0 %v4403_v19 }
 0x9e2   : > { %3979 = vmatprep.subr.bf16.mxu0 %v4212_v4 }
 0x9e5   : > { %3981 = vmatpush3.bf16.msra.mxu0 %v4413_v22 }
 0x9e6   : > { %3982 = vmatprep.subr.bf16.mxu0 %v4212_v4 }
 0x9e9   : > { %3984 = vmatpush3.bf16.msra.mxu0 %v4422_v25 }
 0x9ea   : > { %3997 = vmatprep.subr.bf16.mxu0 %v4212_v4 }
 0x9ec   : > { %3689 = vmatmul.mubr.msk.f32.vlgmr.msra.gmra.mrb[22].mxu0 %vm687_vm2, %v2199_v37 }
 0x9ed   : > { %3999 = vmatpush3.bf16.msra.mxu0 %v4347_v5  ;;  %3721 = vmatprep.mubr.msk.f32.mxu0 %vm4213_vm0, %v4214_v7 }
 0x9ee   : > { %4000 = vmatprep.subr.bf16.mxu0 %v4212_v4 }
 0x9f1   : > { %4002 = vmatpush3.bf16.msra.mxu0 %v4358_v9 }
 0x9f2   : > { %4015 = vmatprep.subr.bf16.mxu0 %v4212_v4 }
 0x9f4   : > { %3722 = vmatmul.mubr.msk.f32.vlgmr.msra.gmra.mrb[24].mxu0 %vm600_vm1, %v4137_v36 }
 0x9f5   : > { %4017 = vmatpush3.bf16.msra.mxu0 %v4462_v49  ;;  %3751 = vmatprep.mubr.msk.f32.mxu0 %vm4213_vm0, %v4214_v7 }
 0x9f6   : > { %4018 = vmatprep.subr.bf16.mxu0 %v4212_v4 }
 0x9f9   : > { %4020 = vmatpush3.bf16.msra.mxu0 %v4474_v52 }
 0x9fa   : > { %4021 = vmatprep.subr.bf16.mxu0 %v4212_v4 }
 0xaaf   : > { %v2117_v38 = vpop.f32.mrb[20].mxu0 }
 0xab0   : > { %v2118_v40 = vadd.f32 %v4548_v28, %v2117_v38  ;;  %v3660_v41 = vpop.f32.mrb[21].mxu0 }
 0xab2   : > { %3026 = vst.msk [vmem:[%s4555_s20 + $0x20] sm:$0xff] %vm3021_vm3, %v2118_v40 }
 0xabf   : > { %v2269_v42 = vpop.f32.mrb[22].mxu0 }
 0xac0   : > { %v2270_v43 = vadd.f32 %v4485_v54, %v2269_v42  ;;  %v3690_v44 = vpop.f32.mrb[23].mxu0 }
 0xac2   : > { %4138 = vtanh.f32 %v2270_v43 }
 0xac7   : > { %v2490_v45 = vpop.f32.mrb[24].mxu0 }
 0xac8   : > { %v3723_v46 = vpop.f32.mrb[25].mxu0  ;;  %v2494_v62 = vadd.f32 %v2490_v45, %v596_v60 }
 0xaca   : > { %4140 = vtanh.f32 %v2494_v62 }
 0xacc   : > { %v4139_v47 = vpop.eup %4138 }
 0xacd   : > { %2496 = vrot.lane.b32.xlu1 %v4139_v47, %s4901_s30  ;;  %3700 = vmatmul.mubr.msk.f32.vlgmr.msra.gmra.mrb[20].mxu1 %vm600_vm1, %v4139_v47 }
 0xace   : > { %3993 = vmatpush3.bf16.msra.mxu1 %v4498_v63  ;;  %3710 = vmatprep.mubr.msk.f32.mxu1 %vm4213_vm0, %v4214_v7 }
 0xacf   : > { %3994 = vmatprep.subr.bf16.mxu1 %v4212_v4 }
 0xad1   : > { %561 = vperm.xlu1 %4114, %v479_v48  }
 0xad2   : > { %3996 = vmatpush3.bf16.msra.mxu1 %v4509_v2 }
 0xad3   : > { %4003 = vmatprep.subr.bf16.mxu1 %v4212_v4 }
 0xad4   : > { %v4141_v0 = vpop.eup %4140 }
 0xb3f   : > { %v2497_v13 = vpop.permute.xlu1 %2496 }
 0xb40   : > { %v2499_v1 = vsel %vm600_vm1, %v4141_v0, %v2497_v13 }
 0xb50   : > { %v562_v10 = vpop.permute.xlu1 %561 }
 0xb51   : > { %v575_v11 = vmul.f32 %v4435_v34, %v562_v10 }
 0xba0   : > { %v2343_v57 = vpop.f32.mrb[20].mxu1 }
 0xba1   : > { %v2344_v58 = vadd.f32 %v4518_v14, %v2343_v57  ;;  %v3701_v59 = vpop.f32.mrb[21].mxu1 }
 0xba3   : > { %v2347_v61 = vmax.f32 %v2344_v58, 0.0 }
 0xba5   : > { %3711 = vmatmul.mubr.msk.f32.vlgmr.msra.gmra.mrb[22].mxu1 %vm600_vm1, %v2347_v61 }
 0xba6   : > { %4005 = vmatpush3.bf16.msra.mxu1 %v4393_v16  ;;  %3740 = vmatprep.mubr.msk.f32.mxu1 %vm4213_vm0, %v4214_v7 }
 0xba7   : > { %4006 = vmatprep.subr.bf16.mxu1 %v4212_v4 }
 0xbaa   : > { %4008 = vmatpush3.bf16.msra.mxu1 %v4403_v19 }
 0xbab   : > { %4009 = vmatprep.subr.bf16.mxu1 %v4212_v4 }
 0xbae   : > { %4011 = vmatpush3.bf16.msra.mxu1 %v4413_v22 }
 0xbaf   : > { %4012 = vmatprep.subr.bf16.mxu1 %v4212_v4 }
 0xbb2   : > { %4014 = vmatpush3.bf16.msra.mxu1 %v4422_v25 }
 0xbb3   : > { %4027 = vmatprep.subr.bf16.mxu1 %v4212_v4 }
 0xbb5   : > { %3741 = vmatmul.mubr.msk.f32.vlgmr.msra.gmra.mrb[24].mxu1 %vm687_vm2, %v2499_v1 }
 0xbb6   : > { %4029 = vmatpush3.bf16.msra.mxu1 %v4347_v5  ;;  %3773 = vmatprep.mubr.msk.f32.mxu1 %vm4213_vm0, %v4214_v7 }
 0xbb7   : > { %4030 = vmatprep.subr.bf16.mxu1 %v4212_v4 }
 0xbba   : > { %4032 = vmatpush3.bf16.msra.mxu1 %v4358_v9  ;;  %v518_v9 = vpop.permute.xlu0 %517 }
 0xbbb   : > { %4045 = vmatprep.subr.bf16.mxu1 %v4212_v4 }
 0xbbd   : > { %3774 = vmatmul.mubr.msk.f32.vlgmr.msra.gmra.mrb[26].mxu1 %vm600_vm1, %v4141_v0 }
 0xbbe   : > { %4047 = vmatpush3.bf16.msra.mxu1 %v4462_v49  ;;  %3803 = vmatprep.mubr.msk.f32.mxu1 %vm4213_vm0, %v4214_v7  ;;  %v531_v49 = vmul.f32 %v4433_v33, %v518_v9 }
 0xbbf   : > { %4048 = vmatprep.subr.bf16.mxu1 %v4212_v4 }
 0xbc0   : > { %v583_v17 = vadd.f32 %v575_v11, %v531_v49 }
 0xbc2   : > { %4050 = vmatpush3.bf16.msra.mxu1 %v4474_v52  ;;  %v597_v18 = vadd.f32 %v4442_v39, %v583_v17 }
 0xbc3   : > { %4051 = vmatprep.subr.bf16.mxu1 %v4212_v4 }
 0xc78   : > { %v2417_v5 = vpop.f32.mrb[22].mxu1 }
 0xc79   : > { %v2418_v3 = vadd.f32 %v4548_v28, %v2417_v5  ;;  %v3712_v6 = vpop.f32.mrb[23].mxu1 }
 0xc7b   : > { %3027 = vst.msk [vmem:[%s4555_s20 + $0x28] sm:$0xff] %vm3021_vm3, %v2418_v3 }
 0xc88   : > { %v2569_v12 = vpop.f32.mrb[24].mxu1 }
 0xc89   : > { %v2570_v15 = vadd.f32 %v4485_v54, %v2569_v12  ;;  %v3742_v52 = vpop.f32.mrb[25].mxu1 }
 0xc8b   : > { %4142 = vtanh.f32 %v2570_v15 }
 0xc90   : > { %v2790_v8 = vpop.f32.mrb[26].mxu1 }
 0xc91   : > { %v2794_v20 = vadd.f32 %v2790_v8, %v597_v18  ;;  %v3775_v21 = vpop.f32.mrb[27].mxu1 }
 0xc93   : > { %4144 = vtanh.f32 %v2794_v20 }
 0xc95   : > { %v4143_v23 = vpop.eup %4142 }
 0xc96   : > { %2796 = vrot.lane.b32.xlu1 %v4143_v23, %s4901_s30  ;;  %3752 = vmatmul.mubr.msk.f32.vlgmr.msra.gmra.mrb[26].mxu0 %vm600_vm1, %v4143_v23  ;;  %s3208_s30 = sshll.u32 %s4310_s10, 8  ;;  %s4218_s10 = smov [#allocation3]  }
 0xc97   : > { %4023 = vmatpush3.bf16.msra.mxu0 %v4498_v63  ;;  %3762 = vmatprep.mubr.msk.f32.mxu0 %vm4213_vm0, %v4214_v7  ;;  %s4831_s0 = scalar_lea.hbm %s4893_s12, %s3208_s30  ;;  %s4152_s19 = sshll.u32 %s4218_s10, 4  ;;  %s4153_s19 = int_to_ptr.vmem [resolvable:$false] %s4152_s19 }
 0xc98   : > { %4024 = vmatprep.subr.bf16.mxu0 %v4212_v4  ;;  %p4155_p0 = scmp.lt.s32.totalorder %s4833_s22, %s4153_s19 }
 0xc9b   : > { %4026 = vmatpush3.bf16.msra.mxu0 %v4509_v2 }
 0xc9c   : > { %4033 = vmatprep.subr.bf16.mxu0 %v4212_v4 }
 0xc9d   : > { %v4145_v33 = vpop.eup %4144 }
 0xc9e   : > { %3030 = vst.msk [vmem:[%s4795_s21] sm:$0xff] %vm600_vm1, %v4145_v33 }
 0xd08   : > { %v2797_v27 = vpop.permute.xlu1 %2796 }
 0xd09   : > { %v2799_v29 = vsel %vm600_vm1, %v4145_v33, %v2797_v27 }
 0xd69   : > { %v2643_v34 = vpop.f32.mrb[26].mxu0 }
 0xd6a   : > { %v2644_v39 = vadd.f32 %v4518_v14, %v2643_v34  ;;  %v3753_v24 = vpop.f32.mrb[27].mxu0 }
 0xd6c   : > { %v2647_v26 = vmax.f32 %v2644_v39, 0.0 }
 0xd6e   : > { %3763 = vmatmul.mubr.msk.f32.vlgmr.msra.gmra.mrb[28].mxu0 %vm600_vm1, %v2647_v26 }
 0xd6f   : > { %4035 = vmatpush3.bf16.msra.mxu0 %v4393_v16  ;;  %3792 = vmatprep.mubr.msk.f32.mxu0 %vm4213_vm0, %v4214_v7 }
 0xd70   : > { %4036 = vmatprep.subr.bf16.mxu0 %v4212_v4 }
 0xd73   : > { %4038 = vmatpush3.bf16.msra.mxu0 %v4403_v19 }
 0xd74   : > { %4039 = vmatprep.subr.bf16.mxu0 %v4212_v4 }
 0xd77   : > { %4041 = vmatpush3.bf16.msra.mxu0 %v4413_v22 }
 0xd78   : > { %4042 = vmatprep.subr.bf16.mxu0 %v4212_v4 }
 0xd7b   : > { %4044 = vmatpush3.bf16.msra.mxu0 %v4422_v25 }
 0xd7e   : > { %3793 = vmatmul.mubr.msk.f32.vlgmr.msra.gmra.mrb[30].mxu0 %vm687_vm2, %v2799_v29 }
 0xe41   : > { %v2717_v16 = vpop.f32.mrb[28].mxu0 }
 0xe42   : > { %v2718_v30 = vadd.f32 %v4548_v28, %v2717_v16  ;;  %v3764_v31 = vpop.f32.mrb[29].mxu0 }
 0xe44   : > { %3028 = vst.msk [vmem:[%s4555_s20 + $0x30] sm:$0xff] %vm3021_vm3, %v2718_v30 }
 0xe51   : > { %v2869_v19 = vpop.f32.mrb[30].mxu0 }
 0xe52   : > { %v2870_v22 = vadd.f32 %v4485_v54, %v2869_v19  ;;  %v3794_v32 = vpop.f32.mrb[31].mxu0 }
 0xe54   : > { %4146 = vtanh.f32 %v2870_v22 }
 0xe5e   : > { %v4147_v35 = vpop.eup %4146 }
 0xe5f   : > { %3804 = vmatmul.mubr.msk.f32.vlgmr.msra.gmra.mrb[28].mxu1 %vm600_vm1, %v4147_v35  ;;  %3031 = vst.msk [vmem:[%s4795_s21 + $0x8] sm:$0xff] %vm600_vm1, %v4147_v35  ;;  %s4154_s21 = scalar_lea.vmem %s4153_s19, 512 }
 0xe60   : > { %4053 = vmatpush3.bf16.msra.mxu1 %v4498_v63  ;;  %3814 = vmatprep.mubr.msk.f32.mxu1 %vm4213_vm0, %v4214_v7  ;;  %p4156_p1 = scmp.lt.s32.totalorder %s4154_s21, %s4148_s18 }
 0xe61   : > { %4054 = vmatprep.subr.bf16.mxu1 %v4212_v4 }
 0xe62   : > { %p4157_p2 = por %p4156_p1, %p4155_p0 }
 0xe64   : > { %4056 = vmatpush3.bf16.msra.mxu1 %v4509_v2  ;;  %p4158_p3 = pnand %p4157_p2, %p4151_p13 }
 0xf32   : > { %v2943_v25 = vpop.f32.mrb[28].mxu1 }
 0xf33   : > { %v2944_v54 = vadd.f32 %v4518_v14, %v2943_v25  ;;  %v3805_v36 = vpop.f32.mrb[29].mxu1 }
 0xf35   : > { %v2947_v37 = vmax.f32 %v2944_v54, 0.0 }
 0xf37   : > { %3815 = vmatmul.mubr.msk.f32.vlgmr.msra.gmra.mrb[30].mxu1 %vm600_vm1, %v2947_v37 }
 0xf38   : > { %4161 = shalt.err (!%p4158_p3)
}
 0xf39   : > { %s4162_s29 = scalar_lea.hbm %s4831_s0, 256  ;;  %s4166_s16 = scalar_lea.hbm %s4893_s12, 512 }
 0xf3a   : > { %p4163_p4 = scmp.ne.s32.totalorder %s4831_s0, %s4162_s29  ;;  %p4167_p9 = scmp.lt.u32.totalorder %s4831_s0, %s4893_s12 }
 0xf3b   : > { %p4168_p10 = scmp.lt.u32.totalorder %s4166_s16, %s4162_s29  ;;  %p4170_p12 = scmp.lt.u32.totalorder %s4162_s29, %s4831_s0 }
 0xf3c   : > { %p4164_p7 = pnand %p4163_p4, %p4327_p5 }
 0xf3d   : > { %p4169_p11 = por %p4168_p10, %p4167_p9 }
 0xf3e   : > { %p4165_p8 = pneg %p4164_p7 }
 0xf3f   : > { %p4171_p13 = por %p4170_p12, %p4169_p11 }
 0xf41   : > { %p4172_p0 = pnand %p4171_p13, %p4165_p8 }
 0xf43   : > { %4175 = shalt.err (!%p4172_p0)
}
 0xf44   : > { %s4219_s18 = smov 128   ;;  %s4220_s21 = smov 8  }
 0xf45   : > { %4057 = dma.vmem_to_hbm [thread:$0]  (%p4327_p5), %s4833_s22, 256, %s4831_s0, %s4837_s17, %s4219_s18, %s4219_s18, %s4220_s21  }
0x100a   : > { %v3017_v4 = vpop.f32.mrb[30].mxu1 }
0x100b   : > { %v3018_v7 = vadd.f32 %v4548_v28, %v3017_v4  ;;  %v3816_v63 = vpop.f32.mrb[31].mxu1 }
0x100d   : > { %3029 = vst.msk [vmem:[%s4555_s20 + $0x38] sm:$0xff] %vm3021_vm3, %v3018_v7 }
0x100e PF: > { %p4063_p1 = scmp.ge.s32.totalorder %s4210_s26, 2  ;;  %s3077_s29 = sand.u32 1, %s4198_s23  }
0x100f   : > { %s3078_s30 = scalar_lea.sflag [#allocation4], %s3077_s29 }
0x1010   : > { %p4060_p2 = pnand %p4063_p1, %p4331_p6 }
0x1012   : > { %4193 = dma.done.wait (!%p4060_p2), %s3078_s30, 256  }
0x1013   : > { %4195 = vsyncadd (!%p4060_p2), %s3078_s30, 4294967040  ;;  %p25_p5 = scmp.ge.s32.totalorder %s4314_s28, 4   ;;  %s4903_s23 = smov %s4202_s24 }
0x1014   : > { %s4904_s24 = smov %s4206_s25  ;;  %s4905_s25 = smov %s4325_s13 }
0x1015   : > { %s4906_s26 = smov %s4314_s28  ;;  %27 = sbr.rel (!%p25_p5) target bundleno = 6 (0x6), region = 114 }
0x101c   :  { %3083 = vsyncpa [#allocation4], 1 }
0x101d   :  { %3085 = vsyncpa [#allocation4 + $0x1], 1 }

</bundles_post_ra>
